<compile_context>
chip_gen: v6e
topology: v6e:2x2x1
jax: 0.10.0
libtpu: 0.0.40
codegen_flags: <defaults>
</compile_context>

<pallas_src>
import numpy as np

import jax
import jax.numpy as jnp
from jax.experimental import pallas as pl
from jax.experimental.pallas import tpu as pltpu


def _round_up(x, m):
    return ((x + m - 1) // m) * m


# ---------------------------------------------------------------------------
# Pallas kernel: the whole MLP on one lane-packed row tile.
#   x_ref      (tm_p, G*C)     f32   C = 2 + num_feature  (packed raw rows)
#   t_mat_ref  (G*C, G*W)      f32   W = pos + num_feature (per-group width)
#   enc_ref    (2,   G*W)      f32   row0 = phase, row1 = passthrough mask
#   w0_ref     (G*W, G*D)      bf16  block-diag height_layer_0[0] (concat wt)
#   w10x_ref   (G*W, G*D)      bf16  block-diag [enc|feat]-part of h_layer_1[0]
#   wmid_ref   (6, G*D, G*D)   bf16  [L01, L02, L03, L10_h, L11, L12]
#   wlast_ref  (G*D, G)        bf16  block-diag height_layer_1[3]
#   b_ref      (8, G*D)        f32   rows 0..6 = tiled biases, row 7 = b13
#   o_ref      (tm_p, G)       f32
# ---------------------------------------------------------------------------
def _feature_mlp_kernel(x_ref, t_mat_ref, enc_ref, w0_ref, w10x_ref,
                        wmid_ref, wlast_ref, b_ref, o_ref):
    f32 = jnp.float32
    x = x_ref[...]                                            # (tm_p, G*C)

    # Fused positional encoding (per lane group), torch ordering
    # [x, y, sin(x), sin(y), cos(x), cos(y), sin(2x), ...] with the feature
    # columns passed through:  t = x @ T  (scales + feature identity), then
    # keep t on passthrough columns and sin(t + phase) on trig columns.
    t = jnp.dot(x, t_mat_ref[...], preferred_element_type=f32)
    phase = enc_ref[0:1, :]
    keep = enc_ref[1:2, :] > 0.5
    x0 = jnp.where(keep, t, jnp.sin(t + phase))               # (tm_p, G*W)

    b = b_ref[...]
    cdt = wmid_ref.dtype                                      # bf16 (or f32)
    x0c = x0.astype(cdt)

    def mm(a, w):                                             # f32 accumulate
        return jnp.dot(a.astype(cdt), w, preferred_element_type=f32)

    relu = lambda v: jnp.maximum(v, 0.0)

    # height_layer_0 : x0 is already the lane-contiguous concat([enc, feat]).
    h = relu(jnp.dot(x0c, w0_ref[...], preferred_element_type=f32) + b[0:1])
    h = relu(mm(h, wmid_ref[0]) + b[1:2])
    h = relu(mm(h, wmid_ref[1]) + b[2:3])
    h = relu(mm(h, wmid_ref[2]) + b[3:4])

    # height_layer_1 : concat([h, x0]) @ W10 == h @ W10_h + x0 @ W10_x
    # (flat accumulation chain -> MRB-friendly on v7x).
    g = relu(mm(h, wmid_ref[3])
             + jnp.dot(x0c, w10x_ref[...], preferred_element_type=f32)
             + b[4:5])
    g = relu(mm(g, wmid_ref[4]) + b[5:6])
    g = relu(mm(g, wmid_ref[5]) + b[6:7])

    out = mm(g, wlast_ref[...]) + b[7:8, 0:1]                 # (tm_p, G)
    o_ref[...] = out.astype(o_ref.dtype)


# ---------------------------------------------------------------------------
# Host wrapper
# ---------------------------------------------------------------------------
def feature_mlp_pallas(norm_xy, feature, packed, *, tm=4096):
    """norm_xy (N, 2) f32, feature (N, F) f32 -> (N, 1) f32."""
    f32 = jnp.float32
    G = int(packed["G"])
    C = norm_xy.shape[-1] + feature.shape[-1]          # 2 + F
    N = norm_xy.shape[0]

    # One merged input stream; the contiguous reshape IS the lane packing
    # (original row r*G+g lands in lanes [g*C, (g+1)*C) of packed row r).
    x_in = jnp.concatenate([norm_xy.astype(f32), feature.astype(f32)], axis=-1)
    n_rows = _round_up(N, G)
    if n_rows != N:                                    # <= G-1 rows of padding
        x_in = jnp.pad(x_in, ((0, n_rows - N), (0, 0)))
    n_p = n_rows // G
    x_packed = x_in.reshape(n_p, G * C)

    GW = packed["t_mat"].shape[1]
    GD = packed["wmid"].shape[-1]

    # Big tiles (amortize ~0.35us/step), but keep >= ~8 grid steps when there
    # is enough work so v7x's two TensorCores stay balanced; never below the
    # 8-sublane minimum.  Partial last block handled by Pallas (no tile pad).
    tm_p_req = max(8, _round_up(tm, 8 * G) // G)
    tm_p = max(8, min(tm_p_req, _round_up(pl.cdiv(n_p, 8), 8)))
    grid = (pl.cdiv(n_p, tm_p),)

    def full_spec(shape):
        nd = len(shape)
        return pl.BlockSpec(shape, lambda i, _nd=nd: (0,) * _nd)

    in_specs = [
        pl.BlockSpec((tm_p, G * C), lambda i: (i, 0)),
        full_spec(packed["t_mat"].shape),
        full_spec(packed["enc_const"].shape),
        full_spec(packed["w0"].shape),
        full_spec(packed["w10x"].shape),
        full_spec(packed["wmid"].shape),
        full_spec(packed["wlast"].shape),
        full_spec(packed["b"].shape),
    ]
    out_spec = pl.BlockSpec((tm_p, G), lambda i: (i, 0))

    D = GD // G
    W = GW // G
    pos = W - feature.shape[-1]
    macs_row = 2 * pos + 2 * W * D + 6 * D * D + D
    param_bytes = sum(int(packed[k].size) * packed[k].dtype.itemsize
                      for k in ("t_mat", "enc_const", "w0", "w10x",
                                "wmid", "wlast", "b"))
    cost = pl.CostEstimate(
        flops=2 * n_rows * macs_row,
        transcendentals=n_rows * max(pos - 2, 0),
        bytes_accessed=4 * n_rows * (C + 1) + param_bytes,
    )

    out_packed = pl.pallas_call(
        _feature_mlp_kernel,
        out_shape=jax.ShapeDtypeStruct((n_p, G), f32),
        grid=grid,
        in_specs=in_specs,
        out_specs=out_spec,
        compiler_params=pltpu.CompilerParams(
            dimension_semantics=("parallel",)),
        cost_estimate=cost,
    )(x_packed, packed["t_mat"], packed["enc_const"], packed["w0"],
      packed["w10x"], packed["wmid"], packed["wlast"], packed["b"])

    return out_packed.reshape(n_rows, 1)[:N]


def feature_mlp_forward(norm_xy, feature, packed, *, tm=4096):
    """norm_xy (..., 2), feature (..., F) -> (..., 1)."""
    lead = norm_xy.shape[:-1]
    xy2 = norm_xy.reshape(-1, norm_xy.shape[-1])
    ft2 = feature.reshape(-1, feature.shape[-1])
    out = feature_mlp_pallas(xy2, ft2, packed, tm=tm)
    return out.reshape(*lead, 1)


# ---------------------------------------------------------------------------
# Parameters: raw nn.Linear-style weights + the lane-packed slabs.
# ---------------------------------------------------------------------------
def init_params(key, num_encoding, num_width, num_feature):
    """Raw per-layer weights mirroring nn.Linear (U(+-1/sqrt(fan_in)));
    stored (fan_in, fan_out) so forward is x @ w + b."""
    pos = 2 * (2 * num_encoding + 1)
    c_in = pos + num_feature
    D = num_width

    def linear(k, fin, fout):
        kw, kb = jax.random.split(k)
        bound = float(fin) ** -0.5
        w = jax.random.uniform(kw, (fin, fout), jnp.float32, -bound, bound)
        b = jax.random.uniform(kb, (fout,), jnp.float32, -bound, bound)
        return w, b

    ks = jax.random.split(key, 8)
    names = ["l00", "l01", "l02", "l03", "l10", "l11", "l12", "l13"]
    fins = [c_in, D, D, D, D + c_in, D, D, D]
    fouts = [D, D, D, D, D, D, D, 1]
    raw = {}
    for n, k, fi, fo in zip(names, ks, fins, fouts):
        raw["w_" + n], raw["b_" + n] = linear(k, fi, fo)
    return raw


def pack_params(raw, num_encoding, num_feature, *, G=8,
                mm_dtype=jnp.bfloat16):
    """Build the lane-packed / block-diagonal slabs consumed by the kernel."""
    pos = 2 * (2 * num_encoding + 1)
    F = num_feature
    C = 2 + F                      # raw per-row input width
    W = pos + F                    # encoded per-row width (concat[enc, feat])
    D = raw["w_l01"].shape[0]

    # Keep each per-group width within one MXU tile (256 lanes).
    G = int(max(1, min(G, 256 // max(W, D, C))))

    def bdiag(block):              # G copies of `block` on the diagonal
        return jnp.kron(jnp.eye(G, dtype=jnp.float32), block)

    # Positional-encoding transform (per-group (C, W) block), torch ordering.
    cols = np.arange(pos)
    scale = np.where(cols < 2, 1.0, 2.0 ** ((cols - 2) // 4)).astype(np.float32)
    phase = np.where((cols < 2) | (((cols - 2) % 4) < 2), 0.0, np.pi / 2)
    keep = (cols < 2).astype(np.float32)
    B = np.zeros((C, W), np.float32)
    B[cols % 2, cols] = scale                         # x/y -> scaled trig arg
    B[2 + np.arange(F), pos + np.arange(F)] = 1.0     # feature passthrough
    phase_full = np.concatenate([phase, np.zeros(F)]).astype(np.float32)
    keep_full = np.concatenate([keep, np.ones(F, np.float32)])

    w10 = raw["w_l10"]                                # (D + W, D): [h | enc|feat]
    mids = [raw["w_l01"], raw["w_l02"], raw["w_l03"], w10[:D],
            raw["w_l11"], raw["w_l12"]]
    biases = [raw["b_l00"], raw["b_l01"], raw["b_l02"], raw["b_l03"],
              raw["b_l10"], raw["b_l11"], raw["b_l12"]]

    return {
        "G": G,
        "t_mat": bdiag(jnp.asarray(B)),                                # (G*C, G*W) f32
        "enc_const": jnp.asarray(
            np.stack([np.tile(phase_full, G), np.tile(keep_full, G)])),  # (2, G*W) f32
        "w0": bdiag(raw["w_l00"]).astype(mm_dtype),                    # (G*W, G*D)
        "w10x": bdiag(w10[D:]).astype(mm_dtype),                       # (G*W, G*D)
        "wmid": jnp.stack([bdiag(w) for w in mids]).astype(mm_dtype),  # (6, G*D, G*D)
        "wlast": bdiag(raw["w_l13"]).astype(mm_dtype),                 # (G*D, G)
        "b": jnp.concatenate(
            [jnp.stack([jnp.tile(b, G) for b in biases]),
             jnp.full((1, G * D), raw["b_l13"][0], jnp.float32)]),     # (8, G*D) f32
    }


# ---------------------------------------------------------------------------
# Pure-JAX f32 reference mirroring the torch forward (explicit concats).
# ---------------------------------------------------------------------------
def encode_position(x, levels, include_input=True):
    outs = [x] if include_input else []
    for i in range(levels):
        t = (2.0 ** i) * x
        outs.append(jnp.sin(t))
        outs.append(jnp.cos(t))
    return jnp.concatenate(outs, axis=-1)


def feature_mlp_reference(norm_xy, feature, raw, num_encoding):
    hi = jax.lax.Precision.HIGHEST
    dot = lambda a, w: jnp.dot(a, w, precision=hi)
    relu = lambda v: jnp.maximum(v, 0.0)
    enc = encode_position(norm_xy.astype(jnp.float32), num_encoding)
    x = jnp.concatenate([enc, feature.astype(jnp.float32)], axis=-1)
    h = relu(dot(x, raw["w_l00"]) + raw["b_l00"])
    h = relu(dot(h, raw["w_l01"]) + raw["b_l01"])
    h = relu(dot(h, raw["w_l02"]) + raw["b_l02"])
    h = relu(dot(h, raw["w_l03"]) + raw["b_l03"])
    cat = jnp.concatenate([h, x], axis=-1)
    g = relu(dot(cat, raw["w_l10"]) + raw["b_l10"])
    g = relu(dot(g, raw["w_l11"]) + raw["b_l11"])
    g = relu(dot(g, raw["w_l12"]) + raw["b_l12"])
    return dot(g, raw["w_l13"]) + raw["b_l13"]


if __name__ == "__main__":
    num_encoding = 4          # pos_channel = 2*(2*4+1) = 18
    num_feature = 14          # -> concat width = 32
    num_width = 32            # D = 32
    B, P = 2, 64              # 128 rows total

    key = jax.random.PRNGKey(0)
    kp, kx, kf = jax.random.split(key, 3)

    raw = init_params(kp, num_encoding, num_width, num_feature)
    norm_xy = jax.random.uniform(kx, (B, P, 2), jnp.float32, -1.0, 1.0)
    feature = jax.random.normal(kf, (B, P, num_feature), jnp.float32)
    ref = feature_mlp_reference(norm_xy, feature, raw, num_encoding)

    # 1) f32 matmul operands: tight check of structure + module f32 semantics.
    packed_f32 = pack_params(raw, num_encoding, num_feature,
                             mm_dtype=jnp.float32)
    out = jax.block_until_ready(feature_mlp_forward(norm_xy, feature, packed_f32))
    assert out.shape == (B, P, 1), out.shape
    assert jnp.allclose(out, ref, atol=2e-3, rtol=2e-3), (
        float(jnp.max(jnp.abs(out - ref))))

    # 2) bf16 matmul operands with f32 accumulation (the fast path):
    #    tolerance loosened as the review notes, f32 check above covers structure.
    packed_bf16 = pack_params(raw, num_encoding, num_feature,
                              mm_dtype=jnp.bfloat16)
    out_b = jax.block_until_ready(feature_mlp_forward(norm_xy, feature, packed_bf16))
    assert out_b.shape == (B, P, 1), out_b.shape
    assert jnp.allclose(out_b, ref, atol=5e-2, rtol=5e-2), (
        float(jnp.max(jnp.abs(out_b - ref))))

    # 3) Row count that is neither a multiple of the lane-pack factor nor the
    #    tile: exercises the <=G-1-row pad and the partial last grid block.
    P2 = 50
    xy2 = jax.random.uniform(jax.random.PRNGKey(1), (B, P2, 2), jnp.float32, -1.0, 1.0)
    ft2 = jax.random.normal(jax.random.PRNGKey(2), (B, P2, num_feature), jnp.float32)
    out2 = jax.block_until_ready(feature_mlp_forward(xy2, ft2, packed_bf16))
    ref2 = feature_mlp_reference(xy2, ft2, raw, num_encoding)
    assert out2.shape == (B, P2, 1), out2.shape
    assert jnp.allclose(out2, ref2, atol=5e-2, rtol=5e-2), (
        float(jnp.max(jnp.abs(out2 - ref2))))

    print("KERNEL_OK")
</pallas_src>

<mosaic_0001>
module attributes {stable_mosaic.version = 11 : i64} {
  func.func @_feature_mlp_kernel(%arg0: i32, %arg1: memref<8x128xf32, #tpu.memory_space<vmem>>, %arg2: memref<128x256xf32, #tpu.memory_space<vmem>>, %arg3: memref<2x256xf32, #tpu.memory_space<vmem>>, %arg4: memref<256x256xf32, #tpu.memory_space<vmem>>, %arg5: memref<256x256xf32, #tpu.memory_space<vmem>>, %arg6: memref<6x256x256xf32, #tpu.memory_space<vmem>>, %arg7: memref<256x8xf32, #tpu.memory_space<vmem>>, %arg8: memref<8x256xf32, #tpu.memory_space<vmem>>, %arg9: memref<8x8xf32, #tpu.memory_space<vmem>>) attributes {dimension_semantics = [#tpu.dimension_semantics<parallel>], iteration_bounds = array<i64: 2>, scalar_prefetch = 0 : i64, scratch_operands = 0 : i64, tpu.core_type = #tpu.core_type<tc>, window_params = [{transform_indices = @transform_0, window_bounds = array<i64: 8, 128>}, {pipeline_mode = #tpu.pipeline_mode<synchronous>, transform_indices = @transform_1, window_bounds = array<i64: 128, 256>}, {pipeline_mode = #tpu.pipeline_mode<synchronous>, transform_indices = @transform_2, window_bounds = array<i64: 2, 256>}, {pipeline_mode = #tpu.pipeline_mode<synchronous>, transform_indices = @transform_3, window_bounds = array<i64: 256, 256>}, {pipeline_mode = #tpu.pipeline_mode<synchronous>, transform_indices = @transform_4, window_bounds = array<i64: 256, 256>}, {pipeline_mode = #tpu.pipeline_mode<synchronous>, transform_indices = @transform_5, window_bounds = array<i64: 6, 256, 256>}, {pipeline_mode = #tpu.pipeline_mode<synchronous>, transform_indices = @transform_6, window_bounds = array<i64: 256, 8>}, {pipeline_mode = #tpu.pipeline_mode<synchronous>, transform_indices = @transform_7, window_bounds = array<i64: 8, 256>}, {transform_indices = @transform_8, window_bounds = array<i64: 8, 8>}]} {
    %c0 = arith.constant 0 : index
    %c0_0 = arith.constant 0 : index
    %0 = vector.load %arg1[%c0, %c0_0] : memref<8x128xf32, #tpu.memory_space<vmem>>, vector<8x128xf32>
    %c0_1 = arith.constant 0 : index
    %c0_2 = arith.constant 0 : index
    %1 = vector.load %arg2[%c0_1, %c0_2] : memref<128x256xf32, #tpu.memory_space<vmem>>, vector<128x256xf32>
    %cst = arith.constant dense<0.000000e+00> : vector<8x256xf32>
    %2 = tpu.matmul %0, %1, %cst {dimension_numbers = #tpu.dot_dimension_numbers<[1], [0], [0], [1], [0, 0, 1, 1], [], []>} : vector<8x128xf32>, vector<128x256xf32>, vector<8x256xf32> -> vector<8x256xf32>
    %c0_3 = arith.constant 0 : index
    %c0_4 = arith.constant 0 : index
    %3 = vector.load %arg3[%c0_3, %c0_4] : memref<2x256xf32, #tpu.memory_space<vmem>>, vector<1x256xf32>
    %c1 = arith.constant 1 : index
    %c0_5 = arith.constant 0 : index
    %4 = vector.load %arg3[%c1, %c0_5] : memref<2x256xf32, #tpu.memory_space<vmem>>, vector<1x256xf32>
    %cst_6 = arith.constant 5.000000e-01 : f32
    %5 = vector.broadcast %cst_6 : f32 to vector<1x256xf32>
    %6 = arith.cmpf ogt, %4, %5 : vector<1x256xf32>
    %7 = vector.broadcast %3 : vector<1x256xf32> to vector<8x256xf32>
    %8 = arith.addf %2, %7 : vector<8x256xf32>
    %9 = math.sin %8 : vector<8x256xf32>
    %10 = vector.shape_cast %6 : vector<1x256xi1> to vector<1x256xi1>
    %11 = vector.broadcast %10 : vector<1x256xi1> to vector<8x256xi1>
    %12 = arith.select %11, %2, %9 : vector<8x256xi1>, vector<8x256xf32>
    %c0_7 = arith.constant 0 : index
    %c0_8 = arith.constant 0 : index
    %13 = vector.load %arg8[%c0_7, %c0_8] : memref<8x256xf32, #tpu.memory_space<vmem>>, vector<8x256xf32>
    %c0_9 = arith.constant 0 : index
    %c0_10 = arith.constant 0 : index
    %14 = vector.load %arg4[%c0_9, %c0_10] : memref<256x256xf32, #tpu.memory_space<vmem>>, vector<256x256xf32>
    %cst_11 = arith.constant dense<0.000000e+00> : vector<8x256xf32>
    %15 = tpu.matmul %12, %14, %cst_11 {dimension_numbers = #tpu.dot_dimension_numbers<[1], [0], [0], [1], [0, 0, 1, 1], [], []>} : vector<8x256xf32>, vector<256x256xf32>, vector<8x256xf32> -> vector<8x256xf32>
    %16 = vector.extract_strided_slice %13 {offsets = [0, 0], sizes = [1, 256], strides = [1, 1]} : vector<8x256xf32> to vector<1x256xf32>
    %17 = vector.broadcast %16 : vector<1x256xf32> to vector<8x256xf32>
    %18 = arith.addf %15, %17 : vector<8x256xf32>
    %cst_12 = arith.constant 0.000000e+00 : f32
    %19 = vector.broadcast %cst_12 : f32 to vector<8x256xf32>
    %20 = arith.maximumf %18, %19 : vector<8x256xf32>
    %c0_13 = arith.constant 0 : index
    %c0_14 = arith.constant 0 : index
    %c0_15 = arith.constant 0 : index
    %21 = vector.load %arg6[%c0_13, %c0_14, %c0_15] : memref<6x256x256xf32, #tpu.memory_space<vmem>>, vector<1x256x256xf32>
    %22 = vector.shape_cast %21 : vector<1x256x256xf32> to vector<256x256xf32>
    %cst_16 = arith.constant dense<0.000000e+00> : vector<8x256xf32>
    %23 = tpu.matmul %20, %22, %cst_16 {dimension_numbers = #tpu.dot_dimension_numbers<[1], [0], [0], [1], [0, 0, 1, 1], [], []>} : vector<8x256xf32>, vector<256x256xf32>, vector<8x256xf32> -> vector<8x256xf32>
    %24 = vector.extract_strided_slice %13 {offsets = [1, 0], sizes = [1, 256], strides = [1, 1]} : vector<8x256xf32> to vector<1x256xf32>
    %25 = vector.broadcast %24 : vector<1x256xf32> to vector<8x256xf32>
    %26 = arith.addf %23, %25 : vector<8x256xf32>
    %cst_17 = arith.constant 0.000000e+00 : f32
    %27 = vector.broadcast %cst_17 : f32 to vector<8x256xf32>
    %28 = arith.maximumf %26, %27 : vector<8x256xf32>
    %c1_18 = arith.constant 1 : index
    %c0_19 = arith.constant 0 : index
    %c0_20 = arith.constant 0 : index
    %29 = vector.load %arg6[%c1_18, %c0_19, %c0_20] : memref<6x256x256xf32, #tpu.memory_space<vmem>>, vector<1x256x256xf32>
    %30 = vector.shape_cast %29 : vector<1x256x256xf32> to vector<256x256xf32>
    %cst_21 = arith.constant dense<0.000000e+00> : vector<8x256xf32>
    %31 = tpu.matmul %28, %30, %cst_21 {dimension_numbers = #tpu.dot_dimension_numbers<[1], [0], [0], [1], [0, 0, 1, 1], [], []>} : vector<8x256xf32>, vector<256x256xf32>, vector<8x256xf32> -> vector<8x256xf32>
    %32 = vector.extract_strided_slice %13 {offsets = [2, 0], sizes = [1, 256], strides = [1, 1]} : vector<8x256xf32> to vector<1x256xf32>
    %33 = vector.broadcast %32 : vector<1x256xf32> to vector<8x256xf32>
    %34 = arith.addf %31, %33 : vector<8x256xf32>
    %cst_22 = arith.constant 0.000000e+00 : f32
    %35 = vector.broadcast %cst_22 : f32 to vector<8x256xf32>
    %36 = arith.maximumf %34, %35 : vector<8x256xf32>
    %c2 = arith.constant 2 : index
    %c0_23 = arith.constant 0 : index
    %c0_24 = arith.constant 0 : index
    %37 = vector.load %arg6[%c2, %c0_23, %c0_24] : memref<6x256x256xf32, #tpu.memory_space<vmem>>, vector<1x256x256xf32>
    %38 = vector.shape_cast %37 : vector<1x256x256xf32> to vector<256x256xf32>
    %cst_25 = arith.constant dense<0.000000e+00> : vector<8x256xf32>
    %39 = tpu.matmul %36, %38, %cst_25 {dimension_numbers = #tpu.dot_dimension_numbers<[1], [0], [0], [1], [0, 0, 1, 1], [], []>} : vector<8x256xf32>, vector<256x256xf32>, vector<8x256xf32> -> vector<8x256xf32>
    %40 = vector.extract_strided_slice %13 {offsets = [3, 0], sizes = [1, 256], strides = [1, 1]} : vector<8x256xf32> to vector<1x256xf32>
    %41 = vector.broadcast %40 : vector<1x256xf32> to vector<8x256xf32>
    %42 = arith.addf %39, %41 : vector<8x256xf32>
    %cst_26 = arith.constant 0.000000e+00 : f32
    %43 = vector.broadcast %cst_26 : f32 to vector<8x256xf32>
    %44 = arith.maximumf %42, %43 : vector<8x256xf32>
    %c3 = arith.constant 3 : index
    %c0_27 = arith.constant 0 : index
    %c0_28 = arith.constant 0 : index
    %45 = vector.load %arg6[%c3, %c0_27, %c0_28] : memref<6x256x256xf32, #tpu.memory_space<vmem>>, vector<1x256x256xf32>
    %46 = vector.shape_cast %45 : vector<1x256x256xf32> to vector<256x256xf32>
    %cst_29 = arith.constant dense<0.000000e+00> : vector<8x256xf32>
    %47 = tpu.matmul %44, %46, %cst_29 {dimension_numbers = #tpu.dot_dimension_numbers<[1], [0], [0], [1], [0, 0, 1, 1], [], []>} : vector<8x256xf32>, vector<256x256xf32>, vector<8x256xf32> -> vector<8x256xf32>
    %c0_30 = arith.constant 0 : index
    %c0_31 = arith.constant 0 : index
    %48 = vector.load %arg5[%c0_30, %c0_31] : memref<256x256xf32, #tpu.memory_space<vmem>>, vector<256x256xf32>
    %cst_32 = arith.constant dense<0.000000e+00> : vector<8x256xf32>
    %49 = tpu.matmul %12, %48, %cst_32 {dimension_numbers = #tpu.dot_dimension_numbers<[1], [0], [0], [1], [0, 0, 1, 1], [], []>} : vector<8x256xf32>, vector<256x256xf32>, vector<8x256xf32> -> vector<8x256xf32>
    %50 = arith.addf %47, %49 : vector<8x256xf32>
    %51 = vector.extract_strided_slice %13 {offsets = [4, 0], sizes = [1, 256], strides = [1, 1]} : vector<8x256xf32> to vector<1x256xf32>
    %52 = vector.broadcast %51 : vector<1x256xf32> to vector<8x256xf32>
    %53 = arith.addf %50, %52 : vector<8x256xf32>
    %cst_33 = arith.constant 0.000000e+00 : f32
    %54 = vector.broadcast %cst_33 : f32 to vector<8x256xf32>
    %55 = arith.maximumf %53, %54 : vector<8x256xf32>
    %c4 = arith.constant 4 : index
    %c0_34 = arith.constant 0 : index
    %c0_35 = arith.constant 0 : index
    %56 = vector.load %arg6[%c4, %c0_34, %c0_35] : memref<6x256x256xf32, #tpu.memory_space<vmem>>, vector<1x256x256xf32>
    %57 = vector.shape_cast %56 : vector<1x256x256xf32> to vector<256x256xf32>
    %cst_36 = arith.constant dense<0.000000e+00> : vector<8x256xf32>
    %58 = tpu.matmul %55, %57, %cst_36 {dimension_numbers = #tpu.dot_dimension_numbers<[1], [0], [0], [1], [0, 0, 1, 1], [], []>} : vector<8x256xf32>, vector<256x256xf32>, vector<8x256xf32> -> vector<8x256xf32>
    %59 = vector.extract_strided_slice %13 {offsets = [5, 0], sizes = [1, 256], strides = [1, 1]} : vector<8x256xf32> to vector<1x256xf32>
    %60 = vector.broadcast %59 : vector<1x256xf32> to vector<8x256xf32>
    %61 = arith.addf %58, %60 : vector<8x256xf32>
    %cst_37 = arith.constant 0.000000e+00 : f32
    %62 = vector.broadcast %cst_37 : f32 to vector<8x256xf32>
    %63 = arith.maximumf %61, %62 : vector<8x256xf32>
    %c5 = arith.constant 5 : index
    %c0_38 = arith.constant 0 : index
    %c0_39 = arith.constant 0 : index
    %64 = vector.load %arg6[%c5, %c0_38, %c0_39] : memref<6x256x256xf32, #tpu.memory_space<vmem>>, vector<1x256x256xf32>
    %65 = vector.shape_cast %64 : vector<1x256x256xf32> to vector<256x256xf32>
    %cst_40 = arith.constant dense<0.000000e+00> : vector<8x256xf32>
    %66 = tpu.matmul %63, %65, %cst_40 {dimension_numbers = #tpu.dot_dimension_numbers<[1], [0], [0], [1], [0, 0, 1, 1], [], []>} : vector<8x256xf32>, vector<256x256xf32>, vector<8x256xf32> -> vector<8x256xf32>
    %67 = vector.extract_strided_slice %13 {offsets = [6, 0], sizes = [1, 256], strides = [1, 1]} : vector<8x256xf32> to vector<1x256xf32>
    %68 = vector.broadcast %67 : vector<1x256xf32> to vector<8x256xf32>
    %69 = arith.addf %66, %68 : vector<8x256xf32>
    %cst_41 = arith.constant 0.000000e+00 : f32
    %70 = vector.broadcast %cst_41 : f32 to vector<8x256xf32>
    %71 = arith.maximumf %69, %70 : vector<8x256xf32>
    %c0_42 = arith.constant 0 : index
    %c0_43 = arith.constant 0 : index
    %72 = vector.load %arg7[%c0_42, %c0_43] : memref<256x8xf32, #tpu.memory_space<vmem>>, vector<256x8xf32>
    %cst_44 = arith.constant dense<0.000000e+00> : vector<8x8xf32>
    %73 = tpu.matmul %71, %72, %cst_44 {dimension_numbers = #tpu.dot_dimension_numbers<[1], [0], [0], [1], [0, 0, 1, 1], [], []>} : vector<8x256xf32>, vector<256x8xf32>, vector<8x8xf32> -> vector<8x8xf32>
    %74 = vector.extract_strided_slice %13 {offsets = [7, 0], sizes = [1, 1], strides = [1, 1]} : vector<8x256xf32> to vector<1x1xf32>
    %75 = vector.broadcast %74 : vector<1x1xf32> to vector<8x8xf32>
    %76 = arith.addf %73, %75 : vector<8x8xf32>
    %c0_45 = arith.constant 0 : index
    %c0_46 = arith.constant 0 : index
    %77 = vector.load %arg9[%c0_45, %c0_46] : memref<8x8xf32, #tpu.memory_space<vmem>>, vector<8x8xf32>
    tpu.vector_store %arg9[%c0_45, %c0_46], %76 {strides = array<i32>} : memref<8x8xf32, #tpu.memory_space<vmem>>, vector<8x8xf32>,
    return
  }
  func.func @transform_0(%arg0: i32) -> (i32, i32) {
    %c0_i32 = arith.constant 0 : i32
    %c0_i32_0 = arith.constant 0 : i32
    return %arg0, %c0_i32 : i32, i32
  }
  func.func @transform_1(%arg0: i32) -> (i32, i32) {
    %c0_i32 = arith.constant 0 : i32
    %c0_i32_0 = arith.constant 0 : i32
    %c0_i32_1 = arith.constant 0 : i32
    return %c0_i32, %c0_i32_0 : i32, i32
  }
  func.func @transform_2(%arg0: i32) -> (i32, i32) {
    %c0_i32 = arith.constant 0 : i32
    %c0_i32_0 = arith.constant 0 : i32
    %c0_i32_1 = arith.constant 0 : i32
    return %c0_i32, %c0_i32_0 : i32, i32
  }
  func.func @transform_3(%arg0: i32) -> (i32, i32) {
    %c0_i32 = arith.constant 0 : i32
    %c0_i32_0 = arith.constant 0 : i32
    %c0_i32_1 = arith.constant 0 : i32
    return %c0_i32, %c0_i32_0 : i32, i32
  }
  func.func @transform_4(%arg0: i32) -> (i32, i32) {
    %c0_i32 = arith.constant 0 : i32
    %c0_i32_0 = arith.constant 0 : i32
    %c0_i32_1 = arith.constant 0 : i32
    return %c0_i32, %c0_i32_0 : i32, i32
  }
  func.func @transform_5(%arg0: i32) -> (i32, i32, i32) {
    %c0_i32 = arith.constant 0 : i32
    %c0_i32_0 = arith.constant 0 : i32
    %c0_i32_1 = arith.constant 0 : i32
    %c0_i32_2 = arith.constant 0 : i32
    return %c0_i32, %c0_i32_0, %c0_i32_1 : i32, i32, i32
  }
  func.func @transform_6(%arg0: i32) -> (i32, i32) {
    %c0_i32 = arith.constant 0 : i32
    %c0_i32_0 = arith.constant 0 : i32
    %c0_i32_1 = arith.constant 0 : i32
    return %c0_i32, %c0_i32_0 : i32, i32
  }
  func.func @transform_7(%arg0: i32) -> (i32, i32) {
    %c0_i32 = arith.constant 0 : i32
    %c0_i32_0 = arith.constant 0 : i32
    %c0_i32_1 = arith.constant 0 : i32
    return %c0_i32, %c0_i32_0 : i32, i32
  }
  func.func @transform_8(%arg0: i32) -> (i32, i32) {
    %c0_i32 = arith.constant 0 : i32
    %c0_i32_0 = arith.constant 0 : i32
    return %arg0, %c0_i32 : i32, i32
  }
}

</mosaic_0001>

<bundles_post_ra>
// kernel: tpu_custom_call.1
= control target key start
LH: loop header
LB: loop body
LE: loop exit
PB: predicated region body
PF: predicated region fallthrough
CT: control target
= control target key end

     0   :  { %13 = vsyncpa [#allocation3], 0  ;;  %s3109_s0 = inlined_call_operand.hbm [shape: f32[16,128], index: 0, kind: input, shape index: {}]   ;;  %s3110_s1 = inlined_call_operand.hbm [shape: f32[128,256], index: 1, kind: input, shape index: {}]   ;;  %s3111_s2 = inlined_call_operand.hbm [shape: f32[2,256], index: 2, kind: input, shape index: {}]   ;;  %s3112_s3 = inlined_call_operand.hbm [shape: f32[256,256], index: 3, kind: input, shape index: {}]   ;;  %s3113_s4 = inlined_call_operand.hbm [shape: f32[256,256], index: 4, kind: input, shape index: {}]   ;;  %s3114_s5 = inlined_call_operand.hbm [shape: f32[6,256,256], index: 5, kind: input, shape index: {}]   ;;  %s3115_s6 = inlined_call_operand.vmem [shape: f32[256,8], index: 6, kind: input, shape index: {}]   ;;  %s3116_s7 = inlined_call_operand.hbm [shape: f32[8,256], index: 7, kind: input, shape index: {}]   ;;  %s3117_s8 = inlined_call_operand.vmem [shape: f32[16,8], index: 8, kind: output, shape index: {}]  }
   0x1   :  { %15 = vsyncpa [#allocation3 + $0x1], 0 }
   0x2   :  { %16 = vsyncpa [#allocation5], 0 }
   0x3   :  { %17 = vsyncpa [#allocation8], 0 }
   0x4   :  { %18 = vsyncpa [#allocation11], 0  ;;  %s2625_s27 = smov 0   ;;  %s2627_s28 = smov 0  }
   0x5   :  { %s2629_s29 = smov 0   ;;  %s2631_s30 = smov 0  }
   0x6 LB: > { %s2563_s9 = smov [#allocation4]   ;;  %s2646_s11 = sadd.s32 4294967295, %s2561_s30   ;;  %s2561_s30 = sphi %s2631_s30, %s3140_s30   ;;  %s2557_s29 = sphi %s2629_s29, %s3139_s29   ;;  %s2553_s28 = sphi %s2627_s28, %s3138_s28   ;;  %s2549_s27 = sphi %s2625_s27, %s3137_s27  }
   0x7   : > { %s240_s10 = sshll.u32 %s2563_s9, 4  ;;  %p2137_p0 = scmp.ge.s32.totalorder %s2561_s30, 1  ;;  %s241_s10 = int_to_ptr.vmem [resolvable:$true] %s240_s10 }
   0x8   : > { %p3118_p1 = scmp.eq.s32.totalorder %s2646_s11, 0  ;;  %p228_p2 = scmp.lt.s32.totalorder %s2561_s30, 3 }
   0x9   : > { %s2564_s13 = smov [#allocation7]   ;;  %s2565_s16 = smov [#allocation10]  }
   0xa   : > { %p2651_p3 = pnand %p2137_p0, %p228_p2  ;;  %s264_s14 = sshll.u32 %s2564_s13, 4  ;;  %s2663_s14 = int_to_ptr.vmem [resolvable:$true] %s264_s14 }
   0xb   : > { %s290_s17 = sshll.u32 %s2565_s16, 4  ;;  %s2342_s19 = scalar_lea.vmem %s241_s10, 4096  ;;  %s2665_s17 = int_to_ptr.vmem [resolvable:$true] %s290_s17 }
   0xc   : > { %s3121_s12 = scalar_select %p2651_p3, 1, 0 }
   0xd   : > { %p2237_p4 = pneg %p2651_p3  ;;  %p2343_p7 = scmp.ne.s32.totalorder %s241_s10, %s2342_s19 }
   0xe   : > { %p2350_p10 = scmp.lt.s32.totalorder %s241_s10, %s241_s10  ;;  %p2351_p11 = scmp.lt.s32.totalorder %s2342_s19, %s2342_s19 }
   0xf   : > { %p2659_p5 = pnand %p2237_p4, %p3118_p1 }
  0x10   : > { %p2352_p12 = por %p2351_p11, %p2350_p10 }
  0x11   : > { %p2669_p6 = pneg %p2659_p5 }
  0x13   : > { %p2345_p8 = pnand %p2343_p7, %p2669_p6 }
  0x15   : > { %p2346_p9 = pneg %p2345_p8 }
  0x17   : > { %p2353_p13 = pnand %p2352_p12, %p2346_p9 }
  0x19   : > { %2356 = shalt.err (!%p2353_p13)
}
  0x1a   : > { %s2566_s20 = smov 256   ;;  %s2567_s21 = smov 16  }
  0x1b   : > { %2240 = dma.hbm_to_vmem [thread:$0]  (!%p2659_p5), %s3110_s1, 4096, %s241_s10, [#allocation5], %s2566_s20, %s2566_s20, %s2567_s21  }
  0x1c   : > { %s2368_s24 = scalar_lea.vmem %s2663_s14, 8192  ;;  %p2376_p7 = scmp.lt.s32.totalorder %s2663_s14, %s2663_s14 }
  0x1d   : > { %p2369_p0 = scmp.ne.s32.totalorder %s2663_s14, %s2368_s24  ;;  %p2377_p8 = scmp.lt.s32.totalorder %s2368_s24, %s2368_s24 }
  0x1f   : > { %p2371_p2 = pnand %p2369_p0, %p2669_p6  ;;  %p2378_p9 = por %p2377_p8, %p2376_p7 }
  0x21   : > { %p2372_p4 = pneg %p2371_p2 }
  0x23   : > { %p2379_p10 = pnand %p2378_p9, %p2372_p4 }
  0x25   : > { %2382 = shalt.err (!%p2379_p10)
}
  0x26   : > { %2246 = dma.hbm_to_vmem [thread:$0]  (!%p2659_p5), %s3112_s3, 8192, %s2663_s14, [#allocation8], %s2566_s20, %s2566_s20, %s2567_s21  }
  0x27   : > { %s2394_s9 = scalar_lea.vmem %s2665_s17, 49152  ;;  %p2402_p0 = scmp.lt.s32.totalorder %s2665_s17, %s2665_s17 }
  0x28   : > { %p2395_p11 = scmp.ne.s32.totalorder %s2665_s17, %s2394_s9  ;;  %p2403_p2 = scmp.lt.s32.totalorder %s2394_s9, %s2394_s9 }
  0x2a   : > { %p2397_p12 = pnand %p2395_p11, %p2669_p6  ;;  %p2404_p4 = por %p2403_p2, %p2402_p0 }
  0x2c   : > { %p2398_p13 = pneg %p2397_p12 }
  0x2e   : > { %p2405_p7 = pnand %p2404_p4, %p2398_p13 }
  0x30   : > { %2408 = shalt.err (!%p2405_p7)
}
  0x31   : > { %2252 = dma.hbm_to_vmem [thread:$0]  (!%p2659_p5), %s3114_s5, 49152, %s2665_s17, [#allocation11], %s2566_s20, %s2566_s20, %s2567_s21  }
  0x32   : > { %s2568_s14 = smov [#allocation6]   ;;  %s2569_s19 = smov [#allocation9]  }
  0x33   : > { %s254_s16 = sshll.u32 %s2568_s14, 4  ;;  %s277_s22 = sshll.u32 %s2569_s19, 4  ;;  %s255_s16 = int_to_ptr.vmem [resolvable:$true] %s254_s16  ;;  %s278_s22 = int_to_ptr.vmem [resolvable:$true] %s277_s22 }
  0x34   : > { %s2420_s23 = scalar_lea.vmem %s255_s16, 64  ;;  %p2428_p11 = scmp.lt.s32.totalorder %s255_s16, %s255_s16 }
  0x35   : > { %p2421_p8 = scmp.ne.s32.totalorder %s255_s16, %s2420_s23  ;;  %p2429_p12 = scmp.lt.s32.totalorder %s2420_s23, %s2420_s23 }
  0x37   : > { %p2423_p9 = pnand %p2421_p8, %p2669_p6  ;;  %p2430_p13 = por %p2429_p12, %p2428_p11 }
  0x39   : > { %p2424_p10 = pneg %p2423_p9 }
  0x3b   : > { %p2431_p0 = pnand %p2430_p13, %p2424_p10 }
  0x3d   : > { %2434 = shalt.err (!%p2431_p0)
}
  0x3e   : > { %2243 = dma.hbm_to_vmem [thread:$0]  (!%p2659_p5), %s3111_s2, 64, %s255_s16, [#allocation5]  }
  0x3f   : > { %s2446_s17 = scalar_lea.vmem %s278_s22, 8192  ;;  %p2454_p8 = scmp.lt.s32.totalorder %s278_s22, %s278_s22 }
  0x40   : > { %p2447_p2 = scmp.ne.s32.totalorder %s278_s22, %s2446_s17  ;;  %p2455_p9 = scmp.lt.s32.totalorder %s2446_s17, %s2446_s17 }
  0x42   : > { %p2449_p4 = pnand %p2447_p2, %p2669_p6  ;;  %p2456_p1 = por %p2455_p9, %p2454_p8 }
  0x44   : > { %p2450_p7 = pneg %p2449_p4 }
  0x46   : > { %p2457_p3 = pnand %p2456_p1, %p2450_p7 }
  0x48   : > { %2460 = shalt.err (!%p2457_p3)
}
  0x49   : > { %2249 = dma.hbm_to_vmem [thread:$0]  (!%p2659_p5), %s3113_s4, 8192, %s278_s22, [#allocation8], %s2566_s20, %s2566_s20, %s2567_s21  }
  0x4a   : > { %s2570_s10 = smov [#allocation12]  }
  0x4b   : > { %s307_s13 = sshll.u32 %s2570_s10, 4  ;;  %s308_s13 = int_to_ptr.vmem [resolvable:$true] %s307_s13 }
  0x4c   : > { %s2472_s14 = scalar_lea.vmem %s308_s13, 256  ;;  %p2480_p1 = scmp.lt.s32.totalorder %s308_s13, %s308_s13 }
  0x4d   : > { %p2473_p10 = scmp.ne.s32.totalorder %s308_s13, %s2472_s14  ;;  %p2481_p3 = scmp.lt.s32.totalorder %s2472_s14, %s2472_s14 }
  0x4f   : > { %p2475_p11 = pnand %p2473_p10, %p2669_p6  ;;  %p2482_p13 = por %p2481_p3, %p2480_p1 }
  0x51   : > { %p2476_p12 = pneg %p2475_p11 }
  0x53   : > { %p2483_p0 = pnand %p2482_p13, %p2476_p12 }
  0x55   : > { %2486 = shalt.err (!%p2483_p0)
}
  0x56   : > { %2255 = dma.hbm_to_vmem [thread:$0]  (!%p2659_p5), %s3116_s7, 256, %s308_s13, [#allocation11]  }
  0x57   : > { %s2738_s18 = sadd.s32 1, %s2561_s30   ;;  %s31_s15 = sadd.s32 1, %s2557_s29 }
  0x58   : > { %s28_s20 = ssub.s32 %s2561_s30, %s2738_s18  ;;  %p38_p6 = scmp.ne.s32.totalorder %s2557_s29, %s2553_s28 }
  0x59   : > { %p29_p2 = scmp.eq.s32.totalorder %s28_s20, 0  ;;  %p39_p4 = scmp.eq.s32.totalorder %s2561_s30, 0 }
  0x5a   : > { %p44_p7 = scmp.ne.s32.totalorder %s2553_s28, %s2549_s27  ;;  %p2266_p8 = scmp.lt.s32.totalorder %s2561_s30, 2 }
  0x5b   : > { %s2750_s21 = scalar_select %p29_p2, %s2557_s29, %s31_s15  }
  0x5c   : > { %p40_p9 = por %p39_p4, %p38_p6  ;;  %p3124_p10 = scmp.eq.s32.totalorder %s2646_s11, 0 }
  0x5d   : > { %s318_s23 = sand.u32 1, %s2557_s29   ;;  %s2146_s24 = sshll.u32 %s2561_s30, 7 }
  0x5e   : > { %p2754_p11 = por %p3124_p10, %p44_p7  ;;  %s2145_s25 = sshll.u32 %s318_s23, 3 }
  0x5f   : > { %s2763_s9 = scalar_lea.hbm %s3109_s0, %s2146_s24  ;;  %s322_s27 = scalar_lea.vmem [#allocation2], %s2145_s25 }
  0x60   : > { %s3125_s22 = scalar_select %p2754_p11, 1, 0 }
  0x61   : > { %s329_s10 = sshll.u32 %s322_s27, 4  ;;  %p2765_p5 = pnand %p2266_p8, %p40_p9  ;;  %s330_s10 = int_to_ptr.vmem [resolvable:$true] %s329_s10 }
  0x62   : > { %s319_s14 = scalar_lea.sflag [#allocation3], %s318_s23  ;;  %s2487_s16 = scalar_lea.hbm %s2763_s9, 128 }
  0x63   : > { %p2488_p12 = scmp.ne.s32.totalorder %s2763_s9, %s2487_s16  ;;  %p2489_p1 = pneg %p2765_p5 }
  0x64   : > { %s2492_s15 = scalar_lea.hbm %s3109_s0, 256  ;;  %p2493_p0 = scmp.lt.s32.totalorder %s2763_s9, %s3109_s0 }
  0x65   : > { %p2490_p3 = pnand %p2489_p1, %p2488_p12  ;;  %p2494_p6 = scmp.lt.s32.totalorder %s2492_s15, %s2487_s16 }
  0x67   : > { %p2491_p13 = pneg %p2490_p3  ;;  %p2495_p2 = por %p2494_p6, %p2493_p0 }
  0x69   : > { %p2496_p4 = pnand %p2495_p2, %p2491_p13 }
  0x6b   : > { %2499 = shalt.err (!%p2496_p4)
}
  0x6c   : > { %s2500_s25 = scalar_lea.vmem %s330_s10, 128  ;;  %s2571_s23 = smov [#allocation2]  }
  0x6d   : > { %p2501_p7 = scmp.ne.s32.totalorder %s330_s10, %s2500_s25  ;;  %s2505_s17 = sshll.u32 %s2571_s23, 4  ;;  %s2506_s17 = int_to_ptr.vmem [resolvable:$false] %s2505_s17 }
  0x6e   : > { %s2507_s26 = scalar_lea.vmem %s2506_s17, 256  ;;  %p2508_p10 = scmp.lt.s32.totalorder %s330_s10, %s2506_s17 }
  0x6f   : > { %p2503_p8 = pnand %p2501_p7, %p2489_p1  ;;  %p2509_p12 = scmp.lt.s32.totalorder %s2507_s26, %s2500_s25 }
  0x71   : > { %p2504_p9 = pneg %p2503_p8  ;;  %p2510_p3 = por %p2509_p12, %p2508_p10 }
  0x73   : > { %p2511_p11 = pnand %p2510_p3, %p2504_p9 }
  0x75   : > { %2514 = shalt.err (!%p2511_p11)
}
  0x76   : > { %2259 = dma.hbm_to_vmem [thread:$0]  (!%p2765_p5), %s2763_s9, 128, %s330_s10, %s319_s14  }
  0x77   : > { %p3127_p13 = scmp.ne.s32.totalorder %s3121_s12, 0 }
  0x78   : > { %s340_s27 = sand.u32 (!%p3127_p13), 1, %s2553_s28   ;;  %p3128_p1 = scmp.ne.s32.totalorder (!%p3127_p13), %s3125_s22, 0 }
  0x79   : > { %338 = sbr.rel (%p3127_p13) target bundleno = 2063 (0x80f), region = 52  ;;  %s2786_s16 = sshll.u32 (!%p3127_p13), %s340_s27, 3 }
  0x7a   : > { %s341_s30 = scalar_lea.sflag (!%p3127_p13), [#allocation3], %s340_s27  ;;  %s344_s19 = scalar_lea.vmem (!%p3127_p13), [#allocation2], %s2786_s16 }
  0x7e   : > { %2532 = dma.done.wait (%p3128_p1), %s341_s30, 128  }
  0x7f   : > { %2534 = vsyncadd (%p3128_p1), %s341_s30, 4294967168  ;;  %p3129_p11 = scmp.eq.s32.totalorder %s2646_s11, 0 }
  0x81   : > { %2536 = dma.done.wait (%p3129_p11), [#allocation5], 4160   ;;  %p3130_p5 = pmov %p3129_p11 }
  0x83   : > { %2538 = vsyncadd (%p3130_p5), [#allocation5], 4294963136  ;;  %p3131_p0 = pmov %p3130_p5 }
  0x85   : > { %2540 = dma.done.wait (%p3131_p0), [#allocation8], 16384   ;;  %p3132_p6 = pmov %p3131_p0 }
  0x86   : > { %p3133_p2 = pmov %p3131_p0 }
  0x87   : > { %2542 = vsyncadd (%p3132_p6), [#allocation8], 4294950912 }
  0x88   : > { %2544 = dma.done.wait (%p3133_p2), [#allocation11], 49408   ;;  %p3134_p4 = pmov %p3131_p0 }
  0x89   : > { %v2572_v0 = vmov 0.0   ;;  %v436_v1 = vld [vmem:[#allocation4 + $0xf8] sm:$0xff]  ;;  %v435_v2 = vld [vmem:[#allocation4 + $0xf0] sm:$0xff]  ;;  %v434_v3 = vld [vmem:[#allocation4 + $0xe8] sm:$0xff]  ;;  %p400_p7 = scmp.lt.s32.totalorder %s2646_s11, 1 }
  0x8a   : > { %2546 = vsyncadd (%p3134_p4), [#allocation11], 4294917888  ;;  %501 = vmatprep.mubr.f32.mxu0 %v2572_v0  ;;  %437 = vmatprep.subr.mxu0 %v436_v1  ;;  %v433_v4 = vld [vmem:[#allocation4 + $0xe0] sm:$0xff]  ;;  %v432_v5 = vld [vmem:[#allocation4 + $0xd8] sm:$0xff] }
  0x8b   : > { %438 = vmatpush1.msra.mxu0 %v435_v2  ;;  %v431_v6 = vld [vmem:[#allocation4 + $0xd0] sm:$0xff]  ;;  %v430_v7 = vld [vmem:[#allocation4 + $0xc8] sm:$0xff]  ;;  %v429_v8 = vld [vmem:[#allocation4 + $0xc0] sm:$0xff]  ;;  %s3142_s11 = smov (!%p400_p7, %s2646_s11), 1 }
  0x8c   : > { %439 = vmatprep.subr.mxu0 %v434_v3  ;;  %v428_v9 = vld [vmem:[#allocation4 + $0xb8] sm:$0xff]  ;;  %v427_v10 = vld [vmem:[#allocation4 + $0xb0] sm:$0xff]  ;;  %v426_v11 = vld [vmem:[#allocation4 + $0xa8] sm:$0xff]  ;;  %s2155_s16 = sshll.u32 %s3142_s11, 3 }
  0x8d   : > { %440 = vmatpush1.msra.mxu0 %v433_v4  ;;  %v425_v12 = vld [vmem:[#allocation4 + $0xa0] sm:$0xff]  ;;  %v424_v13 = vld [vmem:[#allocation4 + $0x98] sm:$0xff]  ;;  %v423_v14 = vld [vmem:[#allocation4 + $0x90] sm:$0xff]  ;;  %s403_s12 = scalar_lea.vmem %s3117_s8, %s2155_s16 }
  0x8e   : > { %441 = vmatprep.subr.mxu0 %v432_v5  ;;  %v422_v15 = vld [vmem:[#allocation4 + $0x88] sm:$0xff]  ;;  %v421_v16 = vld [vmem:[#allocation4 + $0x80] sm:$0xff]  ;;  %v420_v17 = vld [vmem:[#allocation4 + $0x78] sm:$0xff] }
  0x8f   : > { %442 = vmatpush1.msra.mxu0 %v431_v6  ;;  %v419_v18 = vld [vmem:[#allocation4 + $0x70] sm:$0xff]  ;;  %v418_v19 = vld [vmem:[#allocation4 + $0x68] sm:$0xff]  ;;  %v417_v20 = vld [vmem:[#allocation4 + $0x60] sm:$0xff] }
  0x90   : > { %443 = vmatprep.subr.mxu0 %v430_v7  ;;  %v416_v21 = vld [vmem:[#allocation4 + $0x58] sm:$0xff]  ;;  %v415_v22 = vld [vmem:[#allocation4 + $0x50] sm:$0xff]  ;;  %v414_v23 = vld [vmem:[#allocation4 + $0x48] sm:$0xff] }
  0x91   : > { %444 = vmatpush1.msra.mxu0 %v429_v8  ;;  %v413_v24 = vld [vmem:[#allocation4 + $0x40] sm:$0xff]  ;;  %v412_v25 = vld [vmem:[#allocation4 + $0x38] sm:$0xff]  ;;  %v411_v26 = vld [vmem:[#allocation4 + $0x30] sm:$0xff] }
  0x92   : > { %445 = vmatprep.subr.mxu0 %v428_v9  ;;  %v410_v27 = vld [vmem:[#allocation4 + $0x28] sm:$0xff]  ;;  %v409_v28 = vld [vmem:[#allocation4 + $0x20] sm:$0xff]  ;;  %v408_v29 = vld [vmem:[#allocation4 + $0x18] sm:$0xff] }
  0x93   : > { %446 = vmatpush1.msra.mxu0 %v427_v10  ;;  %v407_v30 = vld [vmem:[#allocation4 + $0x10] sm:$0xff]  ;;  %v406_v31 = vld [vmem:[#allocation4 + $0x8] sm:$0xff]  ;;  %v405_v32 = vld [vmem:[#allocation4] sm:$0xff] }
  0x94   : > { %447 = vmatprep.subr.mxu0 %v426_v11  ;;  %v404_v33 = vld [vmem:[%s344_s19] sm:$0xff]  ;;  %v776_v37 = vld [vmem:[#allocation7 + $0xe0] sm:$0xff] }
  0x95   : > { %448 = vmatpush1.msra.mxu0 %v425_v12  ;;  %v779_v34 = vld [vmem:[#allocation7 + $0xf8] sm:$0xff]  ;;  %v778_v35 = vld [vmem:[#allocation7 + $0xf0] sm:$0xff]  ;;  %v777_v36 = vld [vmem:[#allocation7 + $0xe8] sm:$0xff] }
  0x96   : > { %449 = vmatprep.subr.mxu0 %v424_v13  ;;  %820 = vmatprep.subr.mxu1 %v779_v34  ;;  %v775_v38 = vld [vmem:[#allocation7 + $0xd8] sm:$0xff]  ;;  %v774_v39 = vld [vmem:[#allocation7 + $0xd0] sm:$0xff]  ;;  %v773_v40 = vld [vmem:[#allocation7 + $0xc8] sm:$0xff] }
  0x97   : > { %450 = vmatpush1.msra.mxu0 %v423_v14  ;;  %821 = vmatpush1.msra.mxu1 %v778_v35  ;;  %v772_v41 = vld [vmem:[#allocation7 + $0xc0] sm:$0xff]  ;;  %v771_v42 = vld [vmem:[#allocation7 + $0xb8] sm:$0xff]  ;;  %v770_v43 = vld [vmem:[#allocation7 + $0xb0] sm:$0xff] }
  0x98   : > { %451 = vmatprep.subr.mxu0 %v422_v15  ;;  %822 = vmatprep.subr.mxu1 %v777_v36  ;;  %v769_v44 = vld [vmem:[#allocation7 + $0xa8] sm:$0xff]  ;;  %v768_v45 = vld [vmem:[#allocation7 + $0xa0] sm:$0xff]  ;;  %v767_v46 = vld [vmem:[#allocation7 + $0x98] sm:$0xff] }
  0x99   : > { %452 = vmatpush1.msra.mxu0 %v421_v16  ;;  %823 = vmatpush1.msra.mxu1 %v776_v37  ;;  %v766_v47 = vld [vmem:[#allocation7 + $0x90] sm:$0xff]  ;;  %v765_v48 = vld [vmem:[#allocation7 + $0x88] sm:$0xff]  ;;  %v764_v49 = vld [vmem:[#allocation7 + $0x80] sm:$0xff] }
  0x9a   : > { %453 = vmatprep.subr.mxu0 %v420_v17  ;;  %824 = vmatprep.subr.mxu1 %v775_v38  ;;  %v763_v50 = vld [vmem:[#allocation7 + $0x78] sm:$0xff]  ;;  %v762_v51 = vld [vmem:[#allocation7 + $0x70] sm:$0xff]  ;;  %v761_v52 = vld [vmem:[#allocation7 + $0x68] sm:$0xff] }
  0x9b   : > { %454 = vmatpush1.msra.mxu0 %v419_v18  ;;  %825 = vmatpush1.msra.mxu1 %v774_v39  ;;  %v760_v53 = vld [vmem:[#allocation7 + $0x60] sm:$0xff]  ;;  %v759_v54 = vld [vmem:[#allocation7 + $0x58] sm:$0xff]  ;;  %v758_v55 = vld [vmem:[#allocation7 + $0x50] sm:$0xff] }
  0x9c   : > { %455 = vmatprep.subr.mxu0 %v418_v19  ;;  %826 = vmatprep.subr.mxu1 %v773_v40  ;;  %v757_v56 = vld [vmem:[#allocation7 + $0x48] sm:$0xff]  ;;  %v756_v57 = vld [vmem:[#allocation7 + $0x40] sm:$0xff]  ;;  %v755_v58 = vld [vmem:[#allocation7 + $0x38] sm:$0xff] }
  0x9d   : > { %456 = vmatpush1.msra.mxu0 %v417_v20  ;;  %827 = vmatpush1.msra.mxu1 %v772_v41  ;;  %v754_v59 = vld [vmem:[#allocation7 + $0x30] sm:$0xff]  ;;  %v753_v60 = vld [vmem:[#allocation7 + $0x28] sm:$0xff]  ;;  %v752_v61 = vld [vmem:[#allocation7 + $0x20] sm:$0xff] }
  0x9e   : > { %457 = vmatprep.subr.mxu0 %v416_v21  ;;  %828 = vmatprep.subr.mxu1 %v771_v42  ;;  %v751_v62 = vld [vmem:[#allocation7 + $0x18] sm:$0xff]  ;;  %v750_v63 = vld [vmem:[#allocation7 + $0x10] sm:$0xff]  ;;  %v749_v0 = vld [vmem:[#allocation7 + $0x8] sm:$0xff] }
  0x9f   : > { %458 = vmatpush1.msra.mxu0 %v415_v22  ;;  %829 = vmatpush1.msra.mxu1 %v770_v43  ;;  %v748_v1 = vld [vmem:[#allocation7] sm:$0xff]  ;;  %v811_v2 = vld [vmem:[#allocation7 + $0x1f8] sm:$0xff]  ;;  %v810_v3 = vld [vmem:[#allocation7 + $0x1f0] sm:$0xff] }
  0xa0   : > { %459 = vmatprep.subr.mxu0 %v414_v23  ;;  %830 = vmatprep.subr.mxu1 %v769_v44  ;;  %v809_v4 = vld [vmem:[#allocation7 + $0x1e8] sm:$0xff]  ;;  %v808_v5 = vld [vmem:[#allocation7 + $0x1e0] sm:$0xff]  ;;  %v807_v6 = vld [vmem:[#allocation7 + $0x1d8] sm:$0xff] }
  0xa1   : > { %460 = vmatpush1.msra.mxu0 %v413_v24  ;;  %831 = vmatpush1.msra.mxu1 %v768_v45  ;;  %v806_v7 = vld [vmem:[#allocation7 + $0x1d0] sm:$0xff]  ;;  %v805_v8 = vld [vmem:[#allocation7 + $0x1c8] sm:$0xff]  ;;  %v804_v9 = vld [vmem:[#allocation7 + $0x1c0] sm:$0xff] }
  0xa2   : > { %461 = vmatprep.subr.mxu0 %v412_v25  ;;  %832 = vmatprep.subr.mxu1 %v767_v46  ;;  %v803_v10 = vld [vmem:[#allocation7 + $0x1b8] sm:$0xff]  ;;  %v802_v11 = vld [vmem:[#allocation7 + $0x1b0] sm:$0xff]  ;;  %v801_v12 = vld [vmem:[#allocation7 + $0x1a8] sm:$0xff] }
  0xa3   : > { %462 = vmatpush1.msra.mxu0 %v411_v26  ;;  %833 = vmatpush1.msra.mxu1 %v766_v47  ;;  %v800_v13 = vld [vmem:[#allocation7 + $0x1a0] sm:$0xff]  ;;  %v799_v14 = vld [vmem:[#allocation7 + $0x198] sm:$0xff]  ;;  %v798_v15 = vld [vmem:[#allocation7 + $0x190] sm:$0xff]  ;;  %v513_v47 = vlaneseq }
  0xa4   : > { %463 = vmatprep.subr.mxu0 %v410_v27  ;;  %834 = vmatprep.subr.mxu1 %v765_v48  ;;  %v797_v16 = vld [vmem:[#allocation7 + $0x188] sm:$0xff]  ;;  %v796_v17 = vld [vmem:[#allocation7 + $0x180] sm:$0xff]  ;;  %v795_v18 = vld [vmem:[#allocation7 + $0x178] sm:$0xff] }
  0xa5   : > { %464 = vmatpush1.msra.mxu0 %v409_v28  ;;  %835 = vmatpush1.msra.mxu1 %v764_v49  ;;  %v794_v19 = vld [vmem:[#allocation7 + $0x170] sm:$0xff]  ;;  %v793_v20 = vld [vmem:[#allocation7 + $0x168] sm:$0xff]  ;;  %v792_v21 = vld [vmem:[#allocation7 + $0x160] sm:$0xff] }
  0xa6   : > { %465 = vmatprep.subr.mxu0 %v408_v29  ;;  %836 = vmatprep.subr.mxu1 %v763_v50  ;;  %v791_v22 = vld [vmem:[#allocation7 + $0x158] sm:$0xff]  ;;  %v790_v23 = vld [vmem:[#allocation7 + $0x150] sm:$0xff]  ;;  %v789_v24 = vld [vmem:[#allocation7 + $0x148] sm:$0xff] }
  0xa7   : > { %466 = vmatpush1.msra.mxu0 %v407_v30  ;;  %837 = vmatpush1.msra.mxu1 %v762_v51  ;;  %v788_v25 = vld [vmem:[#allocation7 + $0x140] sm:$0xff]  ;;  %v787_v26 = vld [vmem:[#allocation7 + $0x138] sm:$0xff]  ;;  %v786_v27 = vld [vmem:[#allocation7 + $0x130] sm:$0xff] }
  0xa8   : > { %467 = vmatprep.subr.mxu0 %v406_v31  ;;  %838 = vmatprep.subr.mxu1 %v761_v52  ;;  %v785_v28 = vld [vmem:[#allocation7 + $0x128] sm:$0xff]  ;;  %v784_v29 = vld [vmem:[#allocation7 + $0x120] sm:$0xff]  ;;  %v783_v30 = vld [vmem:[#allocation7 + $0x118] sm:$0xff]  ;;  %v2807_v52 = vshrl.u32 %v513_v47, 7 }
  0xa9   : > { %468 = vmatpush1.msra.mxu0 %v405_v32  ;;  %839 = vmatpush1.msra.mxu1 %v760_v53  ;;  %v782_v31 = vld [vmem:[#allocation7 + $0x110] sm:$0xff]  ;;  %v781_v32 = vld [vmem:[#allocation7 + $0x108] sm:$0xff]  ;;  %v924_v34 = vld [vmem:[#allocation10 + $0xf8] sm:$0xff] }
  0xaa   : > { %502 = vmatmul.mubr.f32.vlgmr.msra.gmra.mxu0 %v404_v33  ;;  %840 = vmatprep.subr.mxu1 %v759_v54  ;;  %v780_v33 = vld [vmem:[#allocation7 + $0x100] sm:$0xff]  ;;  %v923_v35 = vld [vmem:[#allocation10 + $0xf0] sm:$0xff]  ;;  %v922_v36 = vld [vmem:[#allocation10 + $0xe8] sm:$0xff] }
  0xab   : > { %841 = vmatpush1.msra.mxu1 %v758_v55  ;;  %965 = vmatprep.subr.mxu0 %v924_v34  ;;  %v921_v37 = vld [vmem:[#allocation10 + $0xe0] sm:$0xff]  ;;  %v920_v38 = vld [vmem:[#allocation10 + $0xd8] sm:$0xff]  ;;  %v919_v39 = vld [vmem:[#allocation10 + $0xd0] sm:$0xff] }
  0xac   : > { %842 = vmatprep.subr.mxu1 %v757_v56  ;;  %966 = vmatpush1.msra.mxu0 %v923_v35  ;;  %v918_v40 = vld [vmem:[#allocation10 + $0xc8] sm:$0xff]  ;;  %v917_v41 = vld [vmem:[#allocation10 + $0xc0] sm:$0xff]  ;;  %v916_v42 = vld [vmem:[#allocation10 + $0xb8] sm:$0xff] }
  0xad   : > { %843 = vmatpush1.msra.mxu1 %v756_v57  ;;  %967 = vmatprep.subr.mxu0 %v922_v36  ;;  %v915_v43 = vld [vmem:[#allocation10 + $0xb0] sm:$0xff]  ;;  %v914_v44 = vld [vmem:[#allocation10 + $0xa8] sm:$0xff]  ;;  %v913_v45 = vld [vmem:[#allocation10 + $0xa0] sm:$0xff]  ;;  %v2810_v57 = vsub.s32 0, %v2807_v52 }
  0xae   : > { %844 = vmatprep.subr.mxu1 %v755_v58  ;;  %968 = vmatpush1.msra.mxu0 %v921_v37  ;;  %v912_v46 = vld [vmem:[#allocation10 + $0x98] sm:$0xff]  ;;  %v911_v48 = vld [vmem:[#allocation10 + $0x90] sm:$0xff]  ;;  %v910_v49 = vld [vmem:[#allocation10 + $0x88] sm:$0xff] }
  0xaf   : > { %845 = vmatpush1.msra.mxu1 %v754_v59  ;;  %969 = vmatprep.subr.mxu0 %v920_v38  ;;  %v909_v50 = vld [vmem:[#allocation10 + $0x80] sm:$0xff]  ;;  %v908_v51 = vld [vmem:[#allocation10 + $0x78] sm:$0xff]  ;;  %v907_v53 = vld [vmem:[#allocation10 + $0x70] sm:$0xff] }
  0xb0   : > { %846 = vmatprep.subr.mxu1 %v753_v60  ;;  %970 = vmatpush1.msra.mxu0 %v919_v39  ;;  %v906_v54 = vld [vmem:[#allocation10 + $0x68] sm:$0xff]  ;;  %v905_v55 = vld [vmem:[#allocation10 + $0x60] sm:$0xff]  ;;  %v904_v56 = vld [vmem:[#allocation10 + $0x58] sm:$0xff] }
  0xb1   : > { %847 = vmatpush1.msra.mxu1 %v752_v61  ;;  %971 = vmatprep.subr.mxu0 %v918_v40  ;;  %v903_v58 = vld [vmem:[#allocation10 + $0x50] sm:$0xff]  ;;  %v508_v59 = vld [vmem:[#allocation6] ss:$2 sm:$0x3]  ;;  %v902_v60 = vld [vmem:[#allocation10 + $0x48] sm:$0xff]  ;;  %v2813_v61 = vsub.s32 1, %v2807_v52 }
  0xb2   : > { %848 = vmatprep.subr.mxu1 %v751_v62  ;;  %972 = vmatpush1.msra.mxu0 %v917_v41  ;;  %v901_v62 = vld [vmem:[#allocation10 + $0x40] sm:$0xff]  ;;  %v948_v34 = vld [vmem:[#allocation10 + $0x1b8] sm:$0xff]  ;;  %v947_v37 = vld [vmem:[#allocation10 + $0x1b0] sm:$0xff]  ;;  %v2573_v41 = vmov 683565275  }
  0xb3   : > { %849 = vmatpush1.msra.mxu1 %v750_v63  ;;  %973 = vmatprep.subr.mxu0 %v916_v42  ;;  %v900_v63 = vld [vmem:[#allocation10 + $0x38] sm:$0xff]  ;;  %v946_v39 = vld [vmem:[#allocation10 + $0x1a8] sm:$0xff] }
  0xb4   : > { %850 = vmatprep.subr.mxu1 %v749_v0  ;;  %974 = vmatpush1.msra.mxu0 %v915_v43  ;;  %v516_v0 = vrot.slane %v508_v59, %v2810_v57 }
  0xb5   : > { %851 = vmatpush1.msra.mxu1 %v748_v1  ;;  %975 = vmatprep.subr.mxu0 %v914_v44  ;;  %v899_v1 = vld [vmem:[#allocation10 + $0x30] sm:$0xff] }
  0xb6   : > { %852 = vmatprep.subr.mxu1 %v811_v2  ;;  %976 = vmatpush1.msra.mxu0 %v913_v45  ;;  %v898_v2 = vld [vmem:[#allocation10 + $0x28] sm:$0xff]  ;;  %v945_v45 = vld [vmem:[#allocation10 + $0x1a0] sm:$0xff] }
  0xb7   : > { %853 = vmatpush2.msra.mxu1 %v810_v3  ;;  %977 = vmatprep.subr.mxu0 %v912_v46  ;;  %v520_v3 = vrot.slane %v508_v59, %v2813_v61  ;;  %v2574_v46 = vmov 2475754826  }
  0xb8   : > { %854 = vmatprep.subr.mxu1 %v809_v4  ;;  %978 = vmatpush1.msra.mxu0 %v911_v48  ;;  %v897_v4 = vld [vmem:[#allocation10 + $0x20] sm:$0xff]  ;;  %v2575_v48 = vmov 2131351028  }
  0xb9   : > { %855 = vmatpush2.msra.mxu1 %v808_v5  ;;  %979 = vmatprep.subr.mxu0 %v910_v49 }
  0xba   : > { %856 = vmatprep.subr.mxu1 %v807_v6  ;;  %980 = vmatpush1.msra.mxu0 %v909_v50  ;;  %v896_v6 = vld [vmem:[#allocation10 + $0x18] sm:$0xff]  ;;  %v2576_v50 = vmov 2102212464  }
  0xbb   : > { %857 = vmatpush2.msra.mxu1 %v806_v7  ;;  %981 = vmatprep.subr.mxu0 %v908_v51 }
  0xbc   : > { %858 = vmatprep.subr.mxu1 %v805_v8  ;;  %982 = vmatpush1.msra.mxu0 %v907_v53  ;;  %v895_v8 = vld [vmem:[#allocation10 + $0x10] sm:$0xff]  ;;  %v2577_v53 = vmov 920167782  }
  0xbd   : > { %859 = vmatpush2.msra.mxu1 %v804_v9  ;;  %983 = vmatprep.subr.mxu0 %v906_v54 }
  0xbe   : > { %860 = vmatprep.subr.mxu1 %v803_v10  ;;  %984 = vmatpush1.msra.mxu0 %v905_v55  ;;  %v894_v10 = vld [vmem:[#allocation10 + $0x8] sm:$0xff]  ;;  %v944_v55 = vld [vmem:[#allocation10 + $0x198] sm:$0xff] }
  0xbf   : > { %861 = vmatpush2.msra.mxu1 %v802_v11  ;;  %985 = vmatprep.subr.mxu0 %v904_v56 }
  0xc0   : > { %862 = vmatprep.subr.mxu1 %v801_v12  ;;  %986 = vmatpush1.msra.mxu0 %v903_v58 }
  0xc1   : > { %863 = vmatpush2.msra.mxu1 %v800_v13  ;;  %987 = vmatprep.subr.mxu0 %v902_v60  ;;  %v943_v60 = vld [vmem:[#allocation10 + $0x190] sm:$0xff] }
  0xc2   : > { %864 = vmatprep.subr.mxu1 %v799_v14  ;;  %988 = vmatpush1.msra.mxu0 %v901_v62  ;;  %v893_v14 = vld [vmem:[#allocation10] sm:$0xff] }
  0xc3   : > { %865 = vmatpush2.msra.mxu1 %v798_v15  ;;  %989 = vmatprep.subr.mxu0 %v900_v63  ;;  %v956_v15 = vld [vmem:[#allocation10 + $0x1f8] sm:$0xff] }
  0xc4   : > { %866 = vmatprep.subr.mxu1 %v797_v16  ;;  %990 = vmatpush1.msra.mxu0 %v899_v1 }
  0xc5   : > { %867 = vmatpush2.msra.mxu1 %v796_v17  ;;  %991 = vmatprep.subr.mxu0 %v898_v2  ;;  %v942_v2 = vld [vmem:[#allocation10 + $0x188] sm:$0xff] }
  0xc6   : > { %868 = vmatprep.subr.mxu1 %v795_v18  ;;  %992 = vmatpush1.msra.mxu0 %v897_v4  ;;  %v955_v18 = vld [vmem:[#allocation10 + $0x1f0] sm:$0xff] }
  0xc7   : > { %869 = vmatpush2.msra.mxu1 %v794_v19  ;;  %993 = vmatprep.subr.mxu0 %v896_v6  ;;  %v954_v19 = vld [vmem:[#allocation10 + $0x1e8] sm:$0xff] }
  0xc8   : > { %870 = vmatprep.subr.mxu1 %v793_v20  ;;  %994 = vmatpush1.msra.mxu0 %v895_v8  ;;  %v941_v8 = vld [vmem:[#allocation10 + $0x180] sm:$0xff] }
  0xc9   : > { %871 = vmatpush2.msra.mxu1 %v792_v21  ;;  %995 = vmatprep.subr.mxu0 %v894_v10 }
  0xca   : > { %872 = vmatprep.subr.mxu1 %v791_v22  ;;  %996 = vmatpush1.msra.mxu0 %v893_v14 }
  0xcb   : > { %873 = vmatpush2.msra.mxu1 %v790_v23  ;;  %997 = vmatprep.subr.mxu0 %v956_v15  ;;  %v953_v23 = vld [vmem:[#allocation10 + $0x1e0] sm:$0xff]  ;;  %v940_v15 = vld [vmem:[#allocation10 + $0x178] sm:$0xff] }
  0xcc   : > { %874 = vmatprep.subr.mxu1 %v789_v24  ;;  %998 = vmatpush2.msra.mxu0 %v955_v18  ;;  %v952_v24 = vld [vmem:[#allocation10 + $0x1d8] sm:$0xff] }
  0xcd   : > { %875 = vmatpush2.msra.mxu1 %v788_v25  ;;  %999 = vmatprep.subr.mxu0 %v954_v19 }
  0xce   : > { %876 = vmatprep.subr.mxu1 %v787_v26  ;;  %1000 = vmatpush2.msra.mxu0 %v953_v23 }
  0xcf   : > { %877 = vmatpush2.msra.mxu1 %v786_v27  ;;  %v951_v27 = vld [vmem:[#allocation10 + $0x1d0] sm:$0xff]  ;;  %1001 = vmatprep.subr.mxu0 %v952_v24 }
  0xd0   : > { %878 = vmatprep.subr.mxu1 %v785_v28  ;;  %1002 = vmatpush2.msra.mxu0 %v951_v27 }
  0xd1   : > { %879 = vmatpush2.msra.mxu1 %v784_v29  ;;  %v950_v29 = vld [vmem:[#allocation10 + $0x1c8] sm:$0xff] }
  0xd2   : > { %880 = vmatprep.subr.mxu1 %v783_v30  ;;  %1003 = vmatprep.subr.mxu0 %v950_v29 }
  0xd3   : > { %881 = vmatpush2.msra.mxu1 %v782_v31 }
  0xd4   : > { %882 = vmatprep.subr.mxu1 %v781_v32  ;;  %v949_v32 = vld [vmem:[#allocation10 + $0x1c0] sm:$0xff] }
  0xd5   : > { %883 = vmatpush2.msra.mxu1 %v780_v33  ;;  %1004 = vmatpush2.msra.mxu0 %v949_v32 }
  0xd6   : > { %1005 = vmatprep.subr.mxu0 %v948_v34 }
  0xd7   : > { %1006 = vmatpush2.msra.mxu0 %v947_v37  ;;  %v936_v37 = vld [vmem:[#allocation10 + $0x158] sm:$0xff] }
  0xd8   : > { %1007 = vmatprep.subr.mxu0 %v946_v39 }
  0xd9   : > { %1008 = vmatpush2.msra.mxu0 %v945_v45  ;;  %v935_v45 = vld [vmem:[#allocation10 + $0x150] sm:$0xff] }
  0xda   : > { %1009 = vmatprep.subr.mxu0 %v944_v55 }
  0xdb   : > { %1010 = vmatpush2.msra.mxu0 %v943_v60 }
  0xdc   : > { %1011 = vmatprep.subr.mxu0 %v942_v2 }
  0xdd   : > { %1012 = vmatpush2.msra.mxu0 %v941_v8 }
  0xde   : > { %1013 = vmatprep.subr.mxu0 %v940_v15 }
 0x16a   : > { %v2817_v5 = vpop.f32.mrf.mxu0 }
 0x16b   : > { %v2820_v7 = vadd.f32 %v516_v0, %v2817_v5  ;;  %v2578_v0 = vmov 1326507024  }
 0x16c   : > { %v2822_v9 = vpop.f32.mrf.mxu0 }
 0x16d   : > { %v525_v11 = vand.u32 2147483647, %v2820_v7  ;;  %v528_v12 = vand.u32 2139095040, %v2820_v7  ;;  %v2827_v13 = vadd.f32 %v520_v3, %v2822_v9  ;;  %vm527_vm14 = vcmp.lt.s32.totalorder %v2820_v7, 0 }
 0x16f   : > { %v529_v16 = vshrl.u32 %v528_v12, 23  ;;  %v632_v17 = vand.u32 2139095040, %v2827_v13  ;;  %v532_v21 = vand.u32 8388607, %v525_v11  ;;  %v629_v28 = vand.u32 2147483647, %v2827_v13 }
 0x170   : > { %vm2932_vm15 = vcmp.le.f32.partialorder %v525_v11, 0.7853982 }
 0x171   : > { %v2156_v20 = vadd.s32 4294967169, %v529_v16  ;;  %v633_v22 = vshrl.u32 %v632_v17, 23  ;;  %v533_v30 = vor.u32 8388608, %v532_v21  ;;  %v2837_v38 = vand.u32 8388607, %v629_v28 }
 0x173   : > { %v535_v25 = vadd.s32 1, %v2156_v20  ;;  %v2160_v26 = vadd.s32 4294967169, %v633_v22  ;;  %v2840_v43 = vshll.u32 %v533_v30, 8  ;;  %v939_v20 = vld [vmem:[#allocation10 + $0x170] sm:$0xff] }
 0x174   : > { %1014 = vmatpush2.msra.mxu0 %v939_v20 }
 0x175   : > { %vm536_vm0 = vcmp.gt.s32.totalorder %v535_v25, 0  ;;  %v639_v31 = vadd.s32 1, %v2160_v26 }
 0x176   : > { %v537_v33 = vsel %vm536_vm0, %v535_v25, 0  ;;  %v938_v25 = vld [vmem:[#allocation10 + $0x168] sm:$0xff]  ;;  %vm631_vm0 = vcmp.lt.s32.totalorder %v2827_v13, 0 }
 0x177   : > { %v2833_v35 = vshrl.u32 %v537_v33, 5  ;;  %v539_v36 = vand.u32 31, %v537_v33  ;;  %vm640_vm1 = vcmp.gt.s32.totalorder %v639_v31, 0  ;;  %1015 = vmatprep.subr.mxu0 %v938_v25 }
 0x178   : > { %v641_v44 = vsel %vm640_vm1, %v639_v31, 0  ;;  %v937_v31 = vld [vmem:[#allocation10 + $0x160] sm:$0xff]  ;;  %vm630_vm1 = vcmp.le.f32.partialorder %v629_v28, 0.7853982 }
 0x179   : > { %v540_v40 = vsub.s32 32, %v539_v36  ;;  %v542_v42 = vshll.u32 %v2573_v41, %v539_v36  ;;  %v545_v47 = vshll.u32 %v2574_v46, %v539_v36  ;;  %v548_v49 = vshll.u32 %v2575_v48, %v539_v36  ;;  %1016 = vmatpush2.msra.mxu0 %v937_v31 }
 0x17a   : > { %v551_v51 = vshll.u32 %v2576_v50, %v539_v36  ;;  %v554_v54 = vshll.u32 %v2577_v53, %v539_v36  ;;  %vm557_vm2 = vcmp.lt.s32.totalorder %v2833_v35, 1  ;;  %vm558_vm3 = vcmp.lt.s32.totalorder %v2833_v35, 2  ;;  %1017 = vmatprep.subr.mxu0 %v936_v37 }
 0x17b   : > { %v543_v56 = vshrl.u32 %v2574_v46, %v540_v40  ;;  %v546_v58 = vshrl.u32 %v2575_v48, %v540_v40  ;;  %v549_v59 = vshrl.u32 %v2576_v50, %v540_v40  ;;  %v541_v62 = vshrl.u32 %v2573_v41, %v540_v40  ;;  %1018 = vmatpush2.msra.mxu0 %v935_v45 }
 0x17c   : > { %v552_v63 = vshrl.u32 %v2577_v53, %v540_v40  ;;  %v555_v1 = vshrl.u32 %v2578_v0, %v540_v40  ;;  %vm559_vm4 = vcmp.lt.s32.totalorder %v2833_v35, 3  ;;  %vm560_vm5 = vcmp.lt.s32.totalorder %v2833_v35, 4  ;;  %v934_v35 = vld [vmem:[#allocation10 + $0x148] sm:$0xff] }
 0x17d   : > { %v544_v3 = vor.u32 %v543_v56, %v542_v42  ;;  %v547_v4 = vor.u32 %v546_v58, %v545_v47  ;;  %v550_v6 = vor.u32 %v549_v59, %v548_v49  ;;  %v643_v14 = vand.u32 31, %v641_v44  ;;  %v933_v58 = vld [vmem:[#allocation10 + $0x140] sm:$0xff]  ;;  %1019 = vmatprep.subr.mxu0 %v934_v35 }
 0x17e   : > { %v553_v10 = vor.u32 %v552_v63, %v551_v51  ;;  %v556_v12 = vor.u32 %v555_v1, %v554_v54  ;;  %v2867_v30 = vshrl.u32 %v641_v44, 5  ;;  %v637_v54 = vor.u32 8388608, %v2837_v38  ;;  %1020 = vmatpush2.msra.mxu0 %v933_v58 }
 0x17f   : > { %v561_v16 = vsel %vm557_vm2, %v541_v62, %v544_v3  ;;  %v562_v17 = vsel %vm560_vm5, %v550_v6, 2102212464  ;;  %v565_v18 = vsel %vm557_vm2, %v544_v3, %v547_v4  ;;  %v569_v19 = vsel %vm557_vm2, %v547_v4, %v550_v6 }
 0x180   : > { %v563_v21 = vsel %vm559_vm4, %v547_v4, %v562_v17  ;;  %v566_v22 = vsel %vm560_vm5, %v553_v10, 920167782  ;;  %v570_v23 = vsel %vm560_vm5, %v556_v12, 1326507024  ;;  %v644_v24 = vsub.s32 32, %v643_v14 }
 0x181   : > { %v564_v26 = vsel %vm558_vm3, %v561_v16, %v563_v21  ;;  %v567_v27 = vsel %vm559_vm4, %v550_v6, %v566_v22  ;;  %v571_v29 = vsel %vm559_vm4, %v553_v10, %v570_v23  ;;  %v655_v34 = vshll.u32 %v2576_v50, %v643_v14 }
 0x182   : > { %v568_v32 = vsel %vm558_vm3, %v565_v18, %v567_v27  ;;  %v572_v33 = vsel %vm558_vm3, %v569_v19, %v571_v29  ;;  %v656_v36 = vshrl.u32 %v2577_v53, %v644_v24  ;;  %v658_v47 = vshll.u32 %v2577_v53, %v643_v14 }
 0x183   : > { %v2875_v39 = vmul.u32.u64.low %v2840_v43, %v572_v33  ;;  %v2876_v40 = vmul.u32.u64.high %v2840_v43, %v572_v33, %v2875_v39  ;;  %v2879_v42 = vmul.u32.u64.low %v2840_v43, %v568_v32  ;;  %v2880_v44 = vmul.u32.u64.high %v2840_v43, %v568_v32, %v2879_v42 }
 0x184   : > { %v659_v49 = vshrl.u32 %v2578_v0, %v644_v24  ;;  %v657_v51 = vor.u32 %v656_v36, %v655_v34  ;;  %v646_v55 = vshll.u32 %v2573_v41, %v643_v14  ;;  %v647_v56 = vshrl.u32 %v2574_v46, %v644_v24 }
 0x185   : > { %v580_v59 = vmul.u32 %v2840_v43, %v564_v26  ;;  %v649_v62 = vshll.u32 %v2574_v46, %v643_v14  ;;  %v650_v63 = vshrl.u32 %v2575_v48, %v644_v24  ;;  %vm582_vm6 = vc.u32 %v2876_v40, %v2879_v42 }
 0x186   : > { %v660_v60 = vor.u32 %v659_v49, %v658_v47  ;;  %v583_v53 = vadd.s32 1, %v2880_v44  ;;  %vm664_vm7 = vcmp.lt.s32.totalorder %v2867_v30, 4  ;;  %v648_v38 = vor.u32 %v647_v56, %v646_v55 }
 0x187   : > { %v651_v1 = vor.u32 %v650_v63, %v649_v62  ;;  %v652_v43 = vshll.u32 %v2575_v48, %v643_v14  ;;  %v653_v46 = vshrl.u32 %v2576_v50, %v644_v24  ;;  %v670_v3 = vsel %vm664_vm7, %v657_v51, 920167782 }
 0x188   : > { %v674_v0 = vsel %vm664_vm7, %v660_v60, 1326507024  ;;  %v584_v2 = vsel %vm582_vm6, %v583_v53, %v2880_v44  ;;  %vm661_vm8 = vcmp.lt.s32.totalorder %v2867_v30, 1  ;;  %vm663_vm9 = vcmp.lt.s32.totalorder %v2867_v30, 3 }
 0x189   : > { %v585_v4 = vadd.s32 %v584_v2, %v580_v59  ;;  %v654_v6 = vor.u32 %v653_v46, %v652_v43  ;;  %v669_v8 = vsel %vm661_vm8, %v648_v38, %v651_v1  ;;  %v675_v10 = vsel %vm663_vm9, %v657_v51, %v674_v0 }
 0x18a   : > { %v645_v48 = vshrl.u32 %v2573_v41, %v644_v24  ;;  %vm662_vm10 = vcmp.lt.s32.totalorder %v2867_v30, 2  ;;  %v677_v50 = vshll.u32 %v637_v54, 8  ;;  %v581_v49 = vadd.s32 %v2879_v42, %v2876_v40 }
 0x18b   : > { %v586_v12 = vadd.s32 536870912, %v585_v4  ;;  %v666_v14 = vsel %vm664_vm7, %v654_v6, 2102212464  ;;  %v671_v15 = vsel %vm663_vm9, %v654_v6, %v670_v3  ;;  %v673_v16 = vsel %vm661_vm8, %v651_v1, %v654_v6 }
 0x18c   : > { %v665_v17 = vsel %vm661_vm8, %v645_v48, %v648_v38  ;;  %v672_v18 = vsel %vm662_vm10, %v669_v8, %v671_v15  ;;  %v676_v19 = vsel %vm662_vm10, %v673_v16, %v675_v10  ;;  %v667_v21 = vsel %vm663_vm9, %v651_v1, %v666_v14 }
 0x18d   : > { %v2910_v20 = vshrl.u32 %v586_v12, 30  ;;  %v2914_v41 = vmul.u32.u64.low %v677_v50, %v676_v19  ;;  %v2915_v22 = vmul.u32.u64.high %v677_v50, %v676_v19, %v2914_v41  ;;  %v668_v26 = vsel %vm662_vm10, %v665_v17, %v667_v21 }
 0x18e   : > { %v2917_v23 = vmul.u32.u64.low %v677_v50, %v672_v18  ;;  %v2918_v24 = vmul.u32.u64.high %v677_v50, %v672_v18, %v2917_v23  ;;  %v684_v32 = vmul.u32 %v677_v50, %v668_v26  ;;  %vm617_vm10 = vweird.f32 %v2820_v7  ;;  %v1061_v50 = vld [vmem:[#allocation10 + $0x2b0] sm:$0xff] }
 0x18f   : > { %v588_v25 = vshll.u32 %v2910_v20, 30  ;;  %v611_v19 = vsub.s32 4, %v2910_v20 }
 0x190   : > { %vm686_vm11 = vc.u32 %v2915_v22, %v2917_v23  ;;  %v687_v29 = vadd.s32 1, %v2918_v24  ;;  %v685_v40 = vadd.s32 %v2917_v23, %v2915_v22 }
 0x191   : > { %v589_v27 = vsub.s32 %v585_v4, %v588_v25  ;;  %v612_v22 = vsel %vm527_vm14, %v611_v19, %v2910_v20  ;;  %v1054_v19 = vld [vmem:[#allocation10 + $0x278] sm:$0xff] }
 0x192   : > { %v688_v33 = vsel %vm686_vm11, %v687_v29, %v2918_v24  ;;  %v614_v25 = vsel %vm2932_vm15, 0, %v612_v22  ;;  %vm721_vm11 = vweird.f32 %v2827_v13  ;;  %v1050_v22 = vld [vmem:[#allocation10 + $0x258] sm:$0xff] }
 0x193   : > { %v591_v31 = vsub.s32 0, %v589_v27  ;;  %v689_v34 = vadd.s32 %v688_v33, %v684_v32  ;;  %v510_v33 = vld [vmem:[#allocation6 + $0x1] ss:$2 sm:$0x3] }
 0x194   : > { %vm511_vm2 = vcmp.gt.f32.partialorder %v510_v33, 0.5  ;;  %v1041_v33 = vld [vmem:[#allocation10 + $0x210] sm:$0xff] }
 0x195   : > { %v2157_v30 = vmin.u32 %v591_v31, %v589_v27  ;;  %v690_v37 = vadd.s32 536870912, %v689_v34 }
 0x197   : > { %v593_v36 = vclz %v2157_v30  ;;  %v691_v44 = vshrl.u32 %v690_v37, 30  ;;  %v2579_v37 = vmov 0  }
 0x199   : > { %v2158_v39 = vadd.s32 4294967294, %v593_v36  ;;  %v692_v45 = vshll.u32 %v691_v44, 30  ;;  %v715_v11 = vsub.s32 4, %v691_v44 }
 0x19b   : > { %vm2159_vm12 = vcmp.lt.s32.totalorder %v2158_v39, 0  ;;  %v693_v54 = vsub.s32 %v689_v34, %v692_v45  ;;  %v716_v26 = vsel %vm631_vm0, %v715_v11, %v691_v44  ;;  %v1051_v11 = vld [vmem:[#allocation10 + $0x260] sm:$0xff] }
 0x19c   : > { %v596_v47 = vsel %vm2159_vm12, 0, %v2158_v39  ;;  %v718_v31 = vsel %vm630_vm1, 0, %v716_v26  ;;  %v733_v39 = vsel %vm511_vm2, 1, %v2579_v37  ;;  %v1046_v26 = vld [vmem:[#allocation10 + $0x238] sm:$0xff]  ;;  %v1099_v37 = vld [vmem:[#allocation10 + $0x3e0] sm:$0xff] }
 0x19d   : > { %v597_v35 = vsub.s32 32, %v596_v47  ;;  %v601_v51 = vsub.s32 4294967266, %v596_v47  ;;  %v598_v55 = vshll.u32 %v589_v27, %v596_v47  ;;  %v695_v59 = vsub.s32 0, %v693_v54 }
 0x19e   : > { %v618_v27 = vadd.s32 3, %v614_v25  ;;  %v722_v30 = vadd.s32 3, %v718_v31  ;;  %v741_v44 = vrot.slane %v733_v39, %v2813_v61  ;;  %v1047_v25 = vld [vmem:[#allocation10 + $0x240] sm:$0xff] }
 0x19f   : > { %v599_v56 = vshrl.u32 %v581_v49, %v597_v35  ;;  %v602_v58 = vadd.s32 127, %v601_v51  ;;  %v2161_v63 = vmin.u32 %v695_v59, %v693_v54  ;;  %v1043_v31 = vld [vmem:[#allocation10 + $0x220] sm:$0xff] }
 0x1a0   : > { %v619_v34 = vand.u32 3, %v618_v27  ;;  %v723_v28 = vand.u32 3, %v722_v30  ;;  %vm743_vm9 = vcmp.eq.s32.totalorder %v741_v44, 1  ;;  %v1045_v27 = vld [vmem:[#allocation10 + $0x230] sm:$0xff]  ;;  %v1040_v30 = vld [vmem:[#allocation10 + $0x208] sm:$0xff]  ;;  %v1094_v44 = vld [vmem:[#allocation10 + $0x3b8] sm:$0xff] }
 0x1a1   : > { %v600_v60 = vor.u32 %v599_v56, %v598_v55  ;;  %v603_v62 = vshll.u32 %v602_v58, 23  ;;  %v697_v38 = vclz %v2161_v63 }
 0x1a2   : > { %vm621_vm3 = vcmp.eq.s32.totalorder %v619_v34, 0  ;;  %vm624_vm4 = vcmp.eq.s32.totalorder %v619_v34, 2  ;;  %vm620_vm5 = vcmp.lt.s32.totalorder %v619_v34, 2  ;;  %vm728_vm6 = vcmp.eq.s32.totalorder %v723_v28, 2  ;;  %v1039_v34 = vld [vmem:[#allocation10 + $0x200] sm:$0xff] }
 0x1a3   : > { %v604_v53 = vor.u32 4788187, %v603_v62  ;;  %v607_v1 = vcvt.s32.f32 %v600_v60  ;;  %v2162_v43 = vadd.s32 4294967294, %v697_v38  ;;  %vm725_vm7 = vcmp.eq.s32.totalorder %v723_v28, 0 }
 0x1a4   : > { %vm724_vm8 = vcmp.lt.s32.totalorder %v723_v28, 2  ;;  %v1100_v28 = vld [vmem:[#allocation10 + $0x3e8] sm:$0xff] }
 0x1a5   : > { %v605_v0 = vand.u32 2147483647, %v604_v53  ;;  %vm2163_vm13 = vcmp.lt.s32.totalorder %v2162_v43, 0 }
 0x1a6   : > { %v700_v2 = vsel %vm2163_vm13, 0, %v2162_v43  ;;  %v928_v43 = vld [vmem:[#allocation10 + $0x118] sm:$0xff]  ;;  %vm2012_vm13 = vcmask 64512  }
 0x1a7   : > { %v608_v46 = vmul.f32 %v607_v1, %v605_v0  ;;  %v701_v42 = vsub.s32 32, %v700_v2  ;;  %v705_v4 = vsub.s32 4294967266, %v700_v2  ;;  %v702_v8 = vshll.u32 %v693_v54, %v700_v2  ;;  %v932_v0 = vld [vmem:[#allocation10 + $0x138] sm:$0xff]  ;;  %v931_v1 = vld [vmem:[#allocation10 + $0x130] sm:$0xff]  ;;  %v926_v2 = vld [vmem:[#allocation10 + $0x108] sm:$0xff] }
 0x1a8   : > { %v737_v54 = vrot.slane %v733_v39, %v2810_v57  ;;  %1021 = vmatprep.subr.mxu0 %v932_v0  ;;  %v1098_v39 = vld [vmem:[#allocation10 + $0x3d8] sm:$0xff]  ;;  %v1083_v0 = vld [vmem:[#allocation10 + $0x360] sm:$0xff] }
 0x1a9   : > { %v609_v3 = vxor.u32 2147483648, %v608_v46  ;;  %v703_v10 = vshrl.u32 %v685_v40, %v701_v42  ;;  %v706_v48 = vadd.s32 127, %v705_v4  ;;  %1022 = vmatpush2.msra.mxu0 %v931_v1  ;;  %v1068_v40 = vld [vmem:[#allocation10 + $0x2e8] sm:$0xff]  ;;  %v1067_v42 = vld [vmem:[#allocation10 + $0x2e0] sm:$0xff]  ;;  %v1066_v4 = vld [vmem:[#allocation10 + $0x2d8] sm:$0xff] }
 0x1aa   : > { %vm742_vm12 = vcmp.eq.s32.totalorder %v737_v54, 1  ;;  %v1091_v54 = vld [vmem:[#allocation10 + $0x3a0] sm:$0xff]  ;;  %v1082_v1 = vld [vmem:[#allocation10 + $0x358] sm:$0xff] }
 0x1ab   : > { %v610_v6 = vsel %vm527_vm14, %v609_v3, %v608_v46  ;;  %v704_v12 = vor.u32 %v703_v10, %v702_v8  ;;  %v707_v14 = vshll.u32 %v706_v48, 23  ;;  %v927_v46 = vld [vmem:[#allocation10 + $0x110] sm:$0xff]  ;;  %v1070_v3 = vld [vmem:[#allocation10 + $0x2f8] sm:$0xff]  ;;  %v1064_v8 = vld [vmem:[#allocation10 + $0x2c8] sm:$0xff] }
 0x1ac   : > { %v613_v15 = vsel %vm2932_vm15, %v2820_v7, %v610_v6  ;;  %v930_v7 = vld [vmem:[#allocation10 + $0x128] sm:$0xff]  ;;  %1111 = vmatprep.subr.mxu1 %v1070_v3  ;;  %v1065_v6 = vld [vmem:[#allocation10 + $0x2d0] sm:$0xff]  ;;  %v1063_v10 = vld [vmem:[#allocation10 + $0x2c0] sm:$0xff] }
 0x1ad   : > { %v708_v16 = vor.u32 4788187, %v707_v14  ;;  %2321 = vcosq.f32 %v613_v15  ;;  %v711_v18 = vcvt.s32.f32 %v704_v12  ;;  %1023 = vmatprep.subr.mxu0 %v930_v7  ;;  %v1062_v48 = vld [vmem:[#allocation10 + $0x2b8] sm:$0xff]  ;;  %v1060_v12 = vld [vmem:[#allocation10 + $0x2a8] sm:$0xff]  ;;  %v1059_v14 = vld [vmem:[#allocation10 + $0x2a0] sm:$0xff] }
 0x1ae   : > { %2323 = vsinq.f32 %v613_v15  ;;  %v1058_v15 = vld [vmem:[#allocation10 + $0x298] sm:$0xff]  ;;  %v1081_v7 = vld [vmem:[#allocation10 + $0x350] sm:$0xff] }
 0x1af   : > { %v709_v17 = vand.u32 2147483647, %v708_v16  ;;  %v1057_v16 = vld [vmem:[#allocation10 + $0x290] sm:$0xff] }
 0x1b1   : > { %v712_v21 = vmul.f32 %v711_v18, %v709_v17  ;;  %v1056_v17 = vld [vmem:[#allocation10 + $0x288] sm:$0xff]  ;;  %v1055_v18 = vld [vmem:[#allocation10 + $0x280] sm:$0xff] }
 0x1b3   : > { %v713_v41 = vxor.u32 2147483648, %v712_v21 }
 0x1b5   : > { %v714_v23 = vsel %vm631_vm0, %v713_v41, %v712_v21  ;;  %v1053_v21 = vld [vmem:[#allocation10 + $0x270] sm:$0xff]  ;;  %v1052_v41 = vld [vmem:[#allocation10 + $0x268] sm:$0xff] }
 0x1b6   : > { %v717_v24 = vsel %vm630_vm1, %v2827_v13, %v714_v23  ;;  %v929_v13 = vld [vmem:[#allocation10 + $0x120] sm:$0xff]  ;;  %v1049_v23 = vld [vmem:[#allocation10 + $0x250] sm:$0xff] }
 0x1b7   : > { %2325 = vcosq.f32 %v717_v24  ;;  %1024 = vmatpush2.msra.mxu0 %v929_v13  ;;  %v1080_v13 = vld [vmem:[#allocation10 + $0x348] sm:$0xff] }
 0x1b8   : > { %2327 = vsinq.f32 %v717_v24  ;;  %1025 = vmatprep.subr.mxu0 %v928_v43  ;;  %v1048_v24 = vld [vmem:[#allocation10 + $0x248] sm:$0xff]  ;;  %v1079_v43 = vld [vmem:[#allocation10 + $0x340] sm:$0xff] }
 0x1b9   : > { %1026 = vmatpush2.msra.mxu0 %v927_v46  ;;  %v1078_v46 = vld [vmem:[#allocation10 + $0x338] sm:$0xff] }
 0x1ba   : > { %v2322_v29 = vpop.eup %2321  ;;  %1027 = vmatprep.subr.mxu0 %v926_v2  ;;  %v2961_v2 = vld [vmem:[#allocation12] sm:$0xff] }
 0x1bb   : > { %v2324_v32 = vpop.eup %2323  ;;  %v625_v36 = vxor.u32 2147483648, %v2322_v29  ;;  %v815_v3 = vrot.slane %v2961_v2, %v2810_v57 }
 0x1bc   : > { %v622_v20 = vxor.u32 2147483648, %v2324_v32 }
 0x1bd   : > { %v626_v47 = vsel %vm624_vm4, %v625_v36, %v2324_v32  ;;  %v1042_v32 = vld [vmem:[#allocation10 + $0x218] sm:$0xff]  ;;  %v1101_v36 = vld [vmem:[#allocation10 + $0x3f0] sm:$0xff] }
 0x1be   : > { %v623_v45 = vsel %vm621_vm3, %v2322_v29, %v622_v20  ;;  %v1044_v29 = vld [vmem:[#allocation10 + $0x228] sm:$0xff]  ;;  %v1102_v20 = vld [vmem:[#allocation10 + $0x3f8] sm:$0xff] }
 0x1bf   : > { %v627_v56 = vsel %vm620_vm5, %v623_v45, %v626_v47  ;;  %v1097_v45 = vld [vmem:[#allocation10 + $0x3d0] sm:$0xff]  ;;  %v1096_v47 = vld [vmem:[#allocation10 + $0x3c8] sm:$0xff] }
 0x1c0   : > { %v628_v62 = vsel %vm617_vm10, nan, %v627_v56  ;;  %v1089_v56 = vld [vmem:[#allocation10 + $0x390] sm:$0xff] }
 0x1c1   : > { %v2958_v38 = vsel %vm742_vm12, %v2817_v5, %v628_v62  ;;  %v1069_v5 = vld [vmem:[#allocation10 + $0x2f0] sm:$0xff] }
 0x1c2   : > { %v1085_v62 = vld [vmem:[#allocation10 + $0x370] sm:$0xff] }
 0x1c4   : > { %v2326_v49 = vpop.eup %2325 }
 0x1c5   : > { %v2328_v35 = vpop.eup %2327  ;;  %v729_v51 = vxor.u32 2147483648, %v2326_v49 }
 0x1c6   : > { %v726_v55 = vxor.u32 2147483648, %v2328_v35 }
 0x1c7   : > { %v730_v58 = vsel %vm728_vm6, %v729_v51, %v2328_v35  ;;  %v1093_v35 = vld [vmem:[#allocation10 + $0x3b0] sm:$0xff]  ;;  %v1092_v51 = vld [vmem:[#allocation10 + $0x3a8] sm:$0xff] }
 0x1c8   : > { %v727_v59 = vsel %vm725_vm7, %v2326_v49, %v726_v55  ;;  %v1095_v49 = vld [vmem:[#allocation10 + $0x3c0] sm:$0xff]  ;;  %v1090_v55 = vld [vmem:[#allocation10 + $0x398] sm:$0xff] }
 0x1c9   : > { %v731_v60 = vsel %vm724_vm8, %v727_v59, %v730_v58  ;;  %v1088_v58 = vld [vmem:[#allocation10 + $0x388] sm:$0xff]  ;;  %v1087_v59 = vld [vmem:[#allocation10 + $0x380] sm:$0xff] }
 0x1ca   : > { %v732_v63 = vsel %vm721_vm11, nan, %v731_v60  ;;  %v1086_v60 = vld [vmem:[#allocation10 + $0x378] sm:$0xff] }
 0x1cb   : > { %v2954_v53 = vsel %vm743_vm9, %v2822_v9, %v732_v63  ;;  %v925_v9 = vld [vmem:[#allocation10 + $0x100] sm:$0xff]  ;;  %v1084_v63 = vld [vmem:[#allocation10 + $0x368] sm:$0xff] }
 0x1cc   : > { %884 = vmatprep.mubr.f32.mxu1 %v2954_v53  ;;  %1028 = vmatpush2.msra.mxu0 %v925_v9  ;;  %v2963_v9 = vld [vmem:[#allocation12 + $0x8] sm:$0xff] }
 0x1cd   : > { %885 = vmatmul.mubr.f32.vlgmr.msra.gmra.mxu1 %v2958_v38 }
 0x1ce   : > { %1112 = vmatpush1.msra.mxu1 %v1069_v5  ;;  %v819_v5 = vrot.slane %v2963_v9, %v2810_v57  ;;  %v1426_v57 = vld [vmem:[#allocation9 + $0xf8] sm:$0xff] }
 0x1cf   : > { %1113 = vmatprep.subr.mxu1 %v1068_v40 }
 0x1d0   : > { %1114 = vmatpush1.msra.mxu1 %v1067_v42 }
 0x1d1   : > { %1115 = vmatprep.subr.mxu1 %v1066_v4 }
 0x1d2   : > { %1116 = vmatpush1.msra.mxu1 %v1065_v6 }
 0x1d3   : > { %1117 = vmatprep.subr.mxu1 %v1064_v8 }
 0x1d4   : > { %1118 = vmatpush1.msra.mxu1 %v1063_v10 }
 0x1d5   : > { %1119 = vmatprep.subr.mxu1 %v1062_v48  ;;  %v1077_v48 = vld [vmem:[#allocation10 + $0x330] sm:$0xff] }
 0x1d6   : > { %1120 = vmatpush1.msra.mxu1 %v1061_v50  ;;  %v1076_v50 = vld [vmem:[#allocation10 + $0x328] sm:$0xff] }
 0x1d7   : > { %1121 = vmatprep.subr.mxu1 %v1060_v12  ;;  %v1075_v12 = vld [vmem:[#allocation10 + $0x320] sm:$0xff] }
 0x1d8   : > { %1122 = vmatpush1.msra.mxu1 %v1059_v14  ;;  %v1074_v14 = vld [vmem:[#allocation10 + $0x318] sm:$0xff] }
 0x1d9   : > { %1123 = vmatprep.subr.mxu1 %v1058_v15  ;;  %v1073_v15 = vld [vmem:[#allocation10 + $0x310] sm:$0xff] }
 0x1da   : > { %1124 = vmatpush1.msra.mxu1 %v1057_v16  ;;  %v1072_v16 = vld [vmem:[#allocation10 + $0x308] sm:$0xff] }
 0x1db   : > { %1125 = vmatprep.subr.mxu1 %v1056_v17  ;;  %v1071_v17 = vld [vmem:[#allocation10 + $0x300] sm:$0xff] }
 0x1dc   : > { %1126 = vmatpush1.msra.mxu1 %v1055_v18  ;;  %v1216_v18 = vld [vmem:[#allocation10 + $0x4f8] sm:$0xff] }
 0x1dd   : > { %1127 = vmatprep.subr.mxu1 %v1054_v19  ;;  %v1215_v19 = vld [vmem:[#allocation10 + $0x4f0] sm:$0xff]  ;;  %1257 = vmatprep.subr.mxu0 %v1216_v18 }
 0x1de   : > { %1128 = vmatpush1.msra.mxu1 %v1053_v21  ;;  %v1214_v21 = vld [vmem:[#allocation10 + $0x4e8] sm:$0xff] }
 0x1df   : > { %1129 = vmatprep.subr.mxu1 %v1052_v41  ;;  %v1213_v41 = vld [vmem:[#allocation10 + $0x4e0] sm:$0xff] }
 0x1e0   : > { %1130 = vmatpush1.msra.mxu1 %v1051_v11  ;;  %v1212_v11 = vld [vmem:[#allocation10 + $0x4d8] sm:$0xff] }
 0x1e1   : > { %1131 = vmatprep.subr.mxu1 %v1050_v22  ;;  %v1211_v22 = vld [vmem:[#allocation10 + $0x4d0] sm:$0xff] }
 0x1e2   : > { %1132 = vmatpush1.msra.mxu1 %v1049_v23  ;;  %v1210_v23 = vld [vmem:[#allocation10 + $0x4c8] sm:$0xff] }
 0x1e3   : > { %1133 = vmatprep.subr.mxu1 %v1048_v24  ;;  %v1209_v24 = vld [vmem:[#allocation10 + $0x4c0] sm:$0xff] }
 0x1e4   : > { %1134 = vmatpush1.msra.mxu1 %v1047_v25  ;;  %v1208_v25 = vld [vmem:[#allocation10 + $0x4b8] sm:$0xff] }
 0x1e5   : > { %1135 = vmatprep.subr.mxu1 %v1046_v26  ;;  %v1207_v26 = vld [vmem:[#allocation10 + $0x4b0] sm:$0xff] }
 0x1e6   : > { %1136 = vmatpush1.msra.mxu1 %v1045_v27  ;;  %v1206_v27 = vld [vmem:[#allocation10 + $0x4a8] sm:$0xff] }
 0x1e7   : > { %1137 = vmatprep.subr.mxu1 %v1044_v29  ;;  %v1205_v29 = vld [vmem:[#allocation10 + $0x4a0] sm:$0xff] }
 0x1e8   : > { %1138 = vmatpush1.msra.mxu1 %v1043_v31  ;;  %v1204_v31 = vld [vmem:[#allocation10 + $0x498] sm:$0xff] }
 0x1e9   : > { %1139 = vmatprep.subr.mxu1 %v1042_v32  ;;  %v1203_v32 = vld [vmem:[#allocation10 + $0x490] sm:$0xff] }
 0x1ea   : > { %1140 = vmatpush1.msra.mxu1 %v1041_v33  ;;  %v1202_v33 = vld [vmem:[#allocation10 + $0x488] sm:$0xff] }
 0x1eb   : > { %1141 = vmatprep.subr.mxu1 %v1040_v30  ;;  %v1201_v30 = vld [vmem:[#allocation10 + $0x480] sm:$0xff] }
 0x1ec   : > { %1142 = vmatpush1.msra.mxu1 %v1039_v34  ;;  %v1200_v34 = vld [vmem:[#allocation10 + $0x478] sm:$0xff] }
 0x1ed   : > { %1143 = vmatprep.subr.mxu1 %v1102_v20  ;;  %v1199_v20 = vld [vmem:[#allocation10 + $0x470] sm:$0xff] }
 0x1ee   : > { %1144 = vmatpush2.msra.mxu1 %v1101_v36  ;;  %v1198_v36 = vld [vmem:[#allocation10 + $0x468] sm:$0xff] }
 0x1ef   : > { %1145 = vmatprep.subr.mxu1 %v1100_v28  ;;  %v1197_v28 = vld [vmem:[#allocation10 + $0x460] sm:$0xff] }
 0x1f0   : > { %1146 = vmatpush2.msra.mxu1 %v1099_v37  ;;  %v1196_v37 = vld [vmem:[#allocation10 + $0x458] sm:$0xff] }
 0x1f1   : > { %1147 = vmatprep.subr.mxu1 %v1098_v39  ;;  %v1195_v39 = vld [vmem:[#allocation10 + $0x450] sm:$0xff] }
 0x1f2   : > { %1148 = vmatpush2.msra.mxu1 %v1097_v45  ;;  %v1194_v45 = vld [vmem:[#allocation10 + $0x448] sm:$0xff] }
 0x1f3   : > { %1149 = vmatprep.subr.mxu1 %v1096_v47  ;;  %v1193_v47 = vld [vmem:[#allocation10 + $0x440] sm:$0xff] }
 0x1f4   : > { %1150 = vmatpush2.msra.mxu1 %v1095_v49  ;;  %v1192_v49 = vld [vmem:[#allocation10 + $0x438] sm:$0xff] }
 0x1f5   : > { %1151 = vmatprep.subr.mxu1 %v1094_v44  ;;  %v1191_v44 = vld [vmem:[#allocation10 + $0x430] sm:$0xff] }
 0x1f6   : > { %1152 = vmatpush2.msra.mxu1 %v1093_v35  ;;  %v1190_v35 = vld [vmem:[#allocation10 + $0x428] sm:$0xff] }
 0x1f7   : > { %1153 = vmatprep.subr.mxu1 %v1092_v51  ;;  %v1189_v51 = vld [vmem:[#allocation10 + $0x420] sm:$0xff] }
 0x1f8   : > { %1154 = vmatpush2.msra.mxu1 %v1091_v54  ;;  %v1188_v54 = vld [vmem:[#allocation10 + $0x418] sm:$0xff] }
 0x1f9   : > { %1155 = vmatprep.subr.mxu1 %v1090_v55  ;;  %v1187_v55 = vld [vmem:[#allocation10 + $0x410] sm:$0xff] }
 0x1fa   : > { %1156 = vmatpush2.msra.mxu1 %v1089_v56  ;;  %v1186_v56 = vld [vmem:[#allocation10 + $0x408] sm:$0xff] }
 0x1fb   : > { %1157 = vmatprep.subr.mxu1 %v1088_v58  ;;  %v1185_v58 = vld [vmem:[#allocation10 + $0x400] sm:$0xff] }
 0x1fc   : > { %1158 = vmatpush2.msra.mxu1 %v1087_v59  ;;  %v1248_v59 = vld [vmem:[#allocation10 + $0x5f8] sm:$0xff] }
 0x1fd   : > { %1159 = vmatprep.subr.mxu1 %v1086_v60  ;;  %v1247_v60 = vld [vmem:[#allocation10 + $0x5f0] sm:$0xff] }
 0x1fe   : > { %1160 = vmatpush2.msra.mxu1 %v1085_v62  ;;  %v1246_v62 = vld [vmem:[#allocation10 + $0x5e8] sm:$0xff] }
 0x1ff   : > { %1161 = vmatprep.subr.mxu1 %v1084_v63  ;;  %v1245_v63 = vld [vmem:[#allocation10 + $0x5e0] sm:$0xff] }
 0x200   : > { %1162 = vmatpush2.msra.mxu1 %v1083_v0  ;;  %v1244_v0 = vld [vmem:[#allocation10 + $0x5d8] sm:$0xff] }
 0x201   : > { %1163 = vmatprep.subr.mxu1 %v1082_v1  ;;  %v1243_v1 = vld [vmem:[#allocation10 + $0x5d0] sm:$0xff] }
 0x202   : > { %1164 = vmatpush2.msra.mxu1 %v1081_v7  ;;  %v1242_v7 = vld [vmem:[#allocation10 + $0x5c8] sm:$0xff] }
 0x203   : > { %1165 = vmatprep.subr.mxu1 %v1080_v13  ;;  %v1241_v13 = vld [vmem:[#allocation10 + $0x5c0] sm:$0xff] }
 0x204   : > { %1166 = vmatpush2.msra.mxu1 %v1079_v43  ;;  %v1240_v43 = vld [vmem:[#allocation10 + $0x5b8] sm:$0xff] }
 0x205   : > { %1167 = vmatprep.subr.mxu1 %v1078_v46  ;;  %v1239_v46 = vld [vmem:[#allocation10 + $0x5b0] sm:$0xff] }
 0x206   : > { %1168 = vmatpush2.msra.mxu1 %v1077_v48  ;;  %v1230_v48 = vld [vmem:[#allocation10 + $0x568] sm:$0xff] }
 0x207   : > { %1169 = vmatprep.subr.mxu1 %v1076_v50  ;;  %v1229_v50 = vld [vmem:[#allocation10 + $0x560] sm:$0xff] }
 0x208   : > { %1170 = vmatpush2.msra.mxu1 %v1075_v12  ;;  %v1228_v12 = vld [vmem:[#allocation10 + $0x558] sm:$0xff] }
 0x209   : > { %1171 = vmatprep.subr.mxu1 %v1074_v14  ;;  %v1227_v14 = vld [vmem:[#allocation10 + $0x550] sm:$0xff] }
 0x20a   : > { %1172 = vmatpush2.msra.mxu1 %v1073_v15  ;;  %v1226_v15 = vld [vmem:[#allocation10 + $0x548] sm:$0xff] }
 0x20b   : > { %1173 = vmatprep.subr.mxu1 %v1072_v16  ;;  %v1225_v16 = vld [vmem:[#allocation10 + $0x540] sm:$0xff] }
 0x20c   : > { %1174 = vmatpush2.msra.mxu1 %v1071_v17  ;;  %v960_v17 = vrot.slane %v2961_v2, %v2813_v61 }
 0x20d   : > { %1459 = vmatprep.subr.mxu1 %v1426_v57  ;;  %v964_v57 = vrot.slane %v2963_v9, %v2813_v61  ;;  %v1420_v61 = vld [vmem:[#allocation9 + $0xc8] sm:$0xff] }
 0x28d   : > { %v886_v40 = vpop.f32.mrf.mxu1 }
 0x28e   : > { %v887_v42 = vadd.f32 %v886_v40, %v815_v3  ;;  %v1238_v3 = vld [vmem:[#allocation10 + $0x5a8] sm:$0xff]  ;;  %v1236_v40 = vld [vmem:[#allocation10 + $0x598] sm:$0xff] }
 0x28f   : > { %v888_v4 = vpop.f32.mrf.mxu1 }
 0x290   : > { %v889_v6 = vadd.f32 %v888_v4, %v819_v5  ;;  %v891_v10 = vmax.f32 %v887_v42, 0.0  ;;  %v1237_v5 = vld [vmem:[#allocation10 + $0x5a0] sm:$0xff]  ;;  %v1235_v42 = vld [vmem:[#allocation10 + $0x590] sm:$0xff]  ;;  %v1234_v4 = vld [vmem:[#allocation10 + $0x588] sm:$0xff] }
 0x292   : > { %v892_v8 = vmax.f32 %v889_v6, 0.0  ;;  %v1233_v6 = vld [vmem:[#allocation10 + $0x580] sm:$0xff] }
 0x294   : > { %1029 = vmatprep.mubr.f32.mxu0 %v892_v8  ;;  %v1232_v8 = vld [vmem:[#allocation10 + $0x578] sm:$0xff] }
 0x295   : > { %1030 = vmatmul.mubr.f32.vlgmr.msra.gmra.mxu0 %v891_v10  ;;  %v1231_v10 = vld [vmem:[#allocation10 + $0x570] sm:$0xff] }
 0x296   : > { %1258 = vmatpush1.msra.mxu0 %v1215_v19 }
 0x297   : > { %1259 = vmatprep.subr.mxu0 %v1214_v21 }
 0x298   : > { %1260 = vmatpush1.msra.mxu0 %v1213_v41 }
 0x299   : > { %1261 = vmatprep.subr.mxu0 %v1212_v11 }
 0x29a   : > { %1262 = vmatpush1.msra.mxu0 %v1211_v22 }
 0x29b   : > { %1263 = vmatprep.subr.mxu0 %v1210_v23  ;;  %v1425_v23 = vld [vmem:[#allocation9 + $0xf0] sm:$0xff] }
 0x29c   : > { %1264 = vmatpush1.msra.mxu0 %v1209_v24  ;;  %v1424_v24 = vld [vmem:[#allocation9 + $0xe8] sm:$0xff] }
 0x29d   : > { %1265 = vmatprep.subr.mxu0 %v1208_v25  ;;  %v1423_v25 = vld [vmem:[#allocation9 + $0xe0] sm:$0xff] }
 0x29e   : > { %1266 = vmatpush1.msra.mxu0 %v1207_v26  ;;  %v1422_v26 = vld [vmem:[#allocation9 + $0xd8] sm:$0xff] }
 0x29f   : > { %1267 = vmatprep.subr.mxu0 %v1206_v27  ;;  %v1421_v27 = vld [vmem:[#allocation9 + $0xd0] sm:$0xff] }
 0x2a0   : > { %1268 = vmatpush1.msra.mxu0 %v1205_v29  ;;  %v1419_v29 = vld [vmem:[#allocation9 + $0xc0] sm:$0xff] }
 0x2a1   : > { %1269 = vmatprep.subr.mxu0 %v1204_v31  ;;  %v1418_v31 = vld [vmem:[#allocation9 + $0xb8] sm:$0xff] }
 0x2a2   : > { %1270 = vmatpush1.msra.mxu0 %v1203_v32  ;;  %v1417_v32 = vld [vmem:[#allocation9 + $0xb0] sm:$0xff] }
 0x2a3   : > { %1271 = vmatprep.subr.mxu0 %v1202_v33  ;;  %v1416_v33 = vld [vmem:[#allocation9 + $0xa8] sm:$0xff] }
 0x2a4   : > { %1272 = vmatpush1.msra.mxu0 %v1201_v30  ;;  %v1415_v30 = vld [vmem:[#allocation9 + $0xa0] sm:$0xff] }
 0x2a5   : > { %1273 = vmatprep.subr.mxu0 %v1200_v34  ;;  %v1414_v34 = vld [vmem:[#allocation9 + $0x98] sm:$0xff] }
 0x2a6   : > { %1274 = vmatpush1.msra.mxu0 %v1199_v20  ;;  %v1413_v20 = vld [vmem:[#allocation9 + $0x90] sm:$0xff] }
 0x2a7   : > { %1275 = vmatprep.subr.mxu0 %v1198_v36  ;;  %v1411_v36 = vld [vmem:[#allocation9 + $0x80] sm:$0xff] }
 0x2a8   : > { %1276 = vmatpush1.msra.mxu0 %v1197_v28  ;;  %v1410_v28 = vld [vmem:[#allocation9 + $0x78] sm:$0xff] }
 0x2a9   : > { %1277 = vmatprep.subr.mxu0 %v1196_v37  ;;  %v1409_v37 = vld [vmem:[#allocation9 + $0x70] sm:$0xff] }
 0x2aa   : > { %1278 = vmatpush1.msra.mxu0 %v1195_v39  ;;  %v1408_v39 = vld [vmem:[#allocation9 + $0x68] sm:$0xff] }
 0x2ab   : > { %1279 = vmatprep.subr.mxu0 %v1194_v45  ;;  %v1407_v45 = vld [vmem:[#allocation9 + $0x60] sm:$0xff] }
 0x2ac   : > { %1280 = vmatpush1.msra.mxu0 %v1193_v47  ;;  %v1406_v47 = vld [vmem:[#allocation9 + $0x58] sm:$0xff] }
 0x2ad   : > { %1281 = vmatprep.subr.mxu0 %v1192_v49  ;;  %v1405_v49 = vld [vmem:[#allocation9 + $0x50] sm:$0xff] }
 0x2ae   : > { %1282 = vmatpush1.msra.mxu0 %v1191_v44  ;;  %v1404_v44 = vld [vmem:[#allocation9 + $0x48] sm:$0xff] }
 0x2af   : > { %1283 = vmatprep.subr.mxu0 %v1190_v35  ;;  %v1403_v35 = vld [vmem:[#allocation9 + $0x40] sm:$0xff] }
 0x2b0   : > { %1284 = vmatpush1.msra.mxu0 %v1189_v51  ;;  %v1402_v51 = vld [vmem:[#allocation9 + $0x38] sm:$0xff] }
 0x2b1   : > { %1285 = vmatprep.subr.mxu0 %v1188_v54  ;;  %v1401_v54 = vld [vmem:[#allocation9 + $0x30] sm:$0xff] }
 0x2b2   : > { %1286 = vmatpush1.msra.mxu0 %v1187_v55  ;;  %v1400_v55 = vld [vmem:[#allocation9 + $0x28] sm:$0xff] }
 0x2b3   : > { %1287 = vmatprep.subr.mxu0 %v1186_v56  ;;  %v1399_v56 = vld [vmem:[#allocation9 + $0x20] sm:$0xff] }
 0x2b4   : > { %1288 = vmatpush1.msra.mxu0 %v1185_v58  ;;  %v1398_v58 = vld [vmem:[#allocation9 + $0x18] sm:$0xff] }
 0x2b5   : > { %1289 = vmatprep.subr.mxu0 %v1248_v59  ;;  %v1397_v59 = vld [vmem:[#allocation9 + $0x10] sm:$0xff] }
 0x2b6   : > { %1290 = vmatpush2.msra.mxu0 %v1247_v60  ;;  %v1396_v60 = vld [vmem:[#allocation9 + $0x8] sm:$0xff] }
 0x2b7   : > { %1291 = vmatprep.subr.mxu0 %v1246_v62  ;;  %v1395_v62 = vld [vmem:[#allocation9] sm:$0xff] }
 0x2b8   : > { %1292 = vmatpush2.msra.mxu0 %v1245_v63  ;;  %v1458_v63 = vld [vmem:[#allocation9 + $0x1f8] sm:$0xff] }
 0x2b9   : > { %1293 = vmatprep.subr.mxu0 %v1244_v0  ;;  %v1457_v0 = vld [vmem:[#allocation9 + $0x1f0] sm:$0xff] }
 0x2ba   : > { %1294 = vmatpush2.msra.mxu0 %v1243_v1  ;;  %v1456_v1 = vld [vmem:[#allocation9 + $0x1e8] sm:$0xff] }
 0x2bb   : > { %1295 = vmatprep.subr.mxu0 %v1242_v7  ;;  %v1455_v7 = vld [vmem:[#allocation9 + $0x1e0] sm:$0xff] }
 0x2bc   : > { %1296 = vmatpush2.msra.mxu0 %v1241_v13  ;;  %v1454_v13 = vld [vmem:[#allocation9 + $0x1d8] sm:$0xff] }
 0x2bd   : > { %1297 = vmatprep.subr.mxu0 %v1240_v43  ;;  %v1453_v43 = vld [vmem:[#allocation9 + $0x1d0] sm:$0xff] }
 0x2be   : > { %1298 = vmatpush2.msra.mxu0 %v1239_v46  ;;  %v1452_v46 = vld [vmem:[#allocation9 + $0x1c8] sm:$0xff] }
 0x2bf   : > { %1299 = vmatprep.subr.mxu0 %v1238_v3  ;;  %v1451_v3 = vld [vmem:[#allocation9 + $0x1c0] sm:$0xff] }
 0x2c0   : > { %1300 = vmatpush2.msra.mxu0 %v1237_v5  ;;  %v1450_v5 = vld [vmem:[#allocation9 + $0x1b8] sm:$0xff] }
 0x2c1   : > { %1301 = vmatprep.subr.mxu0 %v1236_v40  ;;  %v1449_v40 = vld [vmem:[#allocation9 + $0x1b0] sm:$0xff] }
 0x2c2   : > { %1302 = vmatpush2.msra.mxu0 %v1235_v42  ;;  %v1448_v42 = vld [vmem:[#allocation9 + $0x1a8] sm:$0xff] }
 0x2c3   : > { %1303 = vmatprep.subr.mxu0 %v1234_v4  ;;  %v1447_v4 = vld [vmem:[#allocation9 + $0x1a0] sm:$0xff] }
 0x2c4   : > { %1304 = vmatpush2.msra.mxu0 %v1233_v6  ;;  %v1446_v6 = vld [vmem:[#allocation9 + $0x198] sm:$0xff] }
 0x2c5   : > { %1305 = vmatprep.subr.mxu0 %v1232_v8  ;;  %v1445_v8 = vld [vmem:[#allocation9 + $0x190] sm:$0xff] }
 0x2c6   : > { %1306 = vmatpush2.msra.mxu0 %v1231_v10  ;;  %v1444_v10 = vld [vmem:[#allocation9 + $0x188] sm:$0xff] }
 0x2c7   : > { %1307 = vmatprep.subr.mxu0 %v1230_v48  ;;  %v1443_v48 = vld [vmem:[#allocation9 + $0x180] sm:$0xff] }
 0x2c8   : > { %1308 = vmatpush2.msra.mxu0 %v1229_v50  ;;  %v1442_v50 = vld [vmem:[#allocation9 + $0x178] sm:$0xff] }
 0x2c9   : > { %1309 = vmatprep.subr.mxu0 %v1228_v12  ;;  %v1441_v12 = vld [vmem:[#allocation9 + $0x170] sm:$0xff] }
 0x2ca   : > { %1310 = vmatpush2.msra.mxu0 %v1227_v14  ;;  %v1440_v14 = vld [vmem:[#allocation9 + $0x168] sm:$0xff] }
 0x2cb   : > { %1311 = vmatprep.subr.mxu0 %v1226_v15  ;;  %v1439_v15 = vld [vmem:[#allocation9 + $0x160] sm:$0xff] }
 0x2cc   : > { %1312 = vmatpush2.msra.mxu0 %v1225_v16  ;;  %v1438_v16 = vld [vmem:[#allocation9 + $0x158] sm:$0xff] }
 0x355   : > { %v1031_v18 = vpop.f32.mrf.mxu0 }
 0x356   : > { %v1032_v19 = vadd.f32 %v1031_v18, %v960_v17  ;;  %v1437_v17 = vld [vmem:[#allocation9 + $0x150] sm:$0xff]  ;;  %v1435_v18 = vld [vmem:[#allocation9 + $0x140] sm:$0xff] }
 0x357   : > { %v1033_v21 = vpop.f32.mrf.mxu0 }
 0x358   : > { %v1034_v41 = vadd.f32 %v1033_v21, %v964_v57  ;;  %v1036_v22 = vmax.f32 %v1032_v19, 0.0  ;;  %v1436_v57 = vld [vmem:[#allocation9 + $0x148] sm:$0xff]  ;;  %v1434_v19 = vld [vmem:[#allocation9 + $0x138] sm:$0xff]  ;;  %v1433_v21 = vld [vmem:[#allocation9 + $0x130] sm:$0xff] }
 0x35a   : > { %v1037_v11 = vmax.f32 %v1034_v41, 0.0  ;;  %v1432_v41 = vld [vmem:[#allocation9 + $0x128] sm:$0xff] }
 0x35c   : > { %1175 = vmatprep.mubr.f32.mxu1 %v1037_v11  ;;  %v1431_v11 = vld [vmem:[#allocation9 + $0x120] sm:$0xff] }
 0x35d   : > { %1176 = vmatmul.mubr.f32.vlgmr.msra.gmra.mxu1 %v1036_v22  ;;  %v1430_v22 = vld [vmem:[#allocation9 + $0x118] sm:$0xff] }
 0x35e   : > { %1460 = vmatpush1.msra.mxu1 %v1425_v23  ;;  %1523 = vmatprep.mubr.f32.mxu1 %v2954_v53  ;;  %v1412_v53 = vld [vmem:[#allocation9 + $0x88] sm:$0xff]  ;;  %v1429_v23 = vld [vmem:[#allocation9 + $0x110] sm:$0xff] }
 0x35f   : > { %1461 = vmatprep.subr.mxu1 %v1424_v24  ;;  %v1428_v24 = vld [vmem:[#allocation9 + $0x108] sm:$0xff] }
 0x360   : > { %1462 = vmatpush1.msra.mxu1 %v1423_v25  ;;  %v1427_v25 = vld [vmem:[#allocation9 + $0x100] sm:$0xff] }
 0x361   : > { %1463 = vmatprep.subr.mxu1 %v1422_v26  ;;  %v1224_v26 = vld [vmem:[#allocation10 + $0x538] sm:$0xff] }
 0x362   : > { %1464 = vmatpush1.msra.mxu1 %v1421_v27  ;;  %1313 = vmatprep.subr.mxu0 %v1224_v26  ;;  %v1223_v27 = vld [vmem:[#allocation10 + $0x530] sm:$0xff]  ;;  %v1380_v26 = vld [vmem:[#allocation10 + $0x788] sm:$0xff] }
 0x363   : > { %1465 = vmatprep.subr.mxu1 %v1420_v61  ;;  %1314 = vmatpush2.msra.mxu0 %v1223_v27  ;;  %v1222_v61 = vld [vmem:[#allocation10 + $0x528] sm:$0xff]  ;;  %v1379_v27 = vld [vmem:[#allocation10 + $0x780] sm:$0xff] }
 0x364   : > { %1466 = vmatpush1.msra.mxu1 %v1419_v29  ;;  %1315 = vmatprep.subr.mxu0 %v1222_v61  ;;  %v1221_v29 = vld [vmem:[#allocation10 + $0x520] sm:$0xff]  ;;  %v1378_v61 = vld [vmem:[#allocation10 + $0x778] sm:$0xff] }
 0x365   : > { %1467 = vmatprep.subr.mxu1 %v1418_v31  ;;  %1316 = vmatpush2.msra.mxu0 %v1221_v29  ;;  %v1220_v31 = vld [vmem:[#allocation10 + $0x518] sm:$0xff]  ;;  %v1377_v29 = vld [vmem:[#allocation10 + $0x770] sm:$0xff] }
 0x366   : > { %1468 = vmatpush1.msra.mxu1 %v1417_v32  ;;  %v1219_v32 = vld [vmem:[#allocation10 + $0x510] sm:$0xff]  ;;  %1317 = vmatprep.subr.mxu0 %v1220_v31  ;;  %v1376_v31 = vld [vmem:[#allocation10 + $0x768] sm:$0xff] }
 0x367   : > { %1469 = vmatprep.subr.mxu1 %v1416_v33  ;;  %v1218_v33 = vld [vmem:[#allocation10 + $0x508] sm:$0xff]  ;;  %1318 = vmatpush2.msra.mxu0 %v1219_v32  ;;  %v1375_v32 = vld [vmem:[#allocation10 + $0x760] sm:$0xff] }
 0x368   : > { %1470 = vmatpush1.msra.mxu1 %v1415_v30  ;;  %v1217_v30 = vld [vmem:[#allocation10 + $0x500] sm:$0xff]  ;;  %1319 = vmatprep.subr.mxu0 %v1218_v33  ;;  %v1374_v33 = vld [vmem:[#allocation10 + $0x758] sm:$0xff] }
 0x369   : > { %1471 = vmatprep.subr.mxu1 %v1414_v34  ;;  %1320 = vmatpush2.msra.mxu0 %v1217_v30  ;;  %v1362_v34 = vld [vmem:[#allocation10 + $0x6f8] sm:$0xff]  ;;  %v1373_v30 = vld [vmem:[#allocation10 + $0x750] sm:$0xff] }
 0x36a   : > { %1472 = vmatpush1.msra.mxu1 %v1413_v20  ;;  %1530 = vmatprep.subr.mxu0 %v1362_v34  ;;  %v1372_v34 = vld [vmem:[#allocation10 + $0x748] sm:$0xff] }
 0x36b   : > { %1473 = vmatprep.subr.mxu1 %v1412_v53 }
 0x36c   : > { %1474 = vmatpush1.msra.mxu1 %v1411_v36 }
 0x36d   : > { %1475 = vmatprep.subr.mxu1 %v1410_v28 }
 0x36e   : > { %1476 = vmatpush1.msra.mxu1 %v1409_v37 }
 0x36f   : > { %1477 = vmatprep.subr.mxu1 %v1408_v39 }
 0x370   : > { %1478 = vmatpush1.msra.mxu1 %v1407_v45 }
 0x371   : > { %1479 = vmatprep.subr.mxu1 %v1406_v47 }
 0x372   : > { %1480 = vmatpush1.msra.mxu1 %v1405_v49  ;;  %v1361_v49 = vld [vmem:[#allocation10 + $0x6f0] sm:$0xff] }
 0x373   : > { %1481 = vmatprep.subr.mxu1 %v1404_v44  ;;  %v1360_v44 = vld [vmem:[#allocation10 + $0x6e8] sm:$0xff] }
 0x374   : > { %1482 = vmatpush1.msra.mxu1 %v1403_v35  ;;  %v1359_v35 = vld [vmem:[#allocation10 + $0x6e0] sm:$0xff] }
 0x375   : > { %1483 = vmatprep.subr.mxu1 %v1402_v51  ;;  %v1358_v51 = vld [vmem:[#allocation10 + $0x6d8] sm:$0xff] }
 0x376   : > { %1484 = vmatpush1.msra.mxu1 %v1401_v54  ;;  %v1357_v54 = vld [vmem:[#allocation10 + $0x6d0] sm:$0xff] }
 0x377   : > { %1485 = vmatprep.subr.mxu1 %v1400_v55  ;;  %v1356_v55 = vld [vmem:[#allocation10 + $0x6c8] sm:$0xff] }
 0x378   : > { %1486 = vmatpush1.msra.mxu1 %v1399_v56  ;;  %v1353_v56 = vld [vmem:[#allocation10 + $0x6b0] sm:$0xff] }
 0x379   : > { %1487 = vmatprep.subr.mxu1 %v1398_v58  ;;  %v1352_v58 = vld [vmem:[#allocation10 + $0x6a8] sm:$0xff] }
 0x37a   : > { %1488 = vmatpush1.msra.mxu1 %v1397_v59  ;;  %v1351_v59 = vld [vmem:[#allocation10 + $0x6a0] sm:$0xff] }
 0x37b   : > { %1489 = vmatprep.subr.mxu1 %v1396_v60  ;;  %v1350_v60 = vld [vmem:[#allocation10 + $0x698] sm:$0xff] }
 0x37c   : > { %1490 = vmatpush1.msra.mxu1 %v1395_v62  ;;  %v1349_v62 = vld [vmem:[#allocation10 + $0x690] sm:$0xff] }
 0x37d   : > { %1491 = vmatprep.subr.mxu1 %v1458_v63  ;;  %v1348_v63 = vld [vmem:[#allocation10 + $0x688] sm:$0xff] }
 0x37e   : > { %1492 = vmatpush2.msra.mxu1 %v1457_v0  ;;  %v1347_v0 = vld [vmem:[#allocation10 + $0x680] sm:$0xff] }
 0x37f   : > { %1493 = vmatprep.subr.mxu1 %v1456_v1  ;;  %v1346_v1 = vld [vmem:[#allocation10 + $0x678] sm:$0xff] }
 0x380   : > { %1494 = vmatpush2.msra.mxu1 %v1455_v7  ;;  %v1345_v7 = vld [vmem:[#allocation10 + $0x670] sm:$0xff] }
 0x381   : > { %1495 = vmatprep.subr.mxu1 %v1454_v13  ;;  %v1344_v13 = vld [vmem:[#allocation10 + $0x668] sm:$0xff] }
 0x382   : > { %1496 = vmatpush2.msra.mxu1 %v1453_v43  ;;  %v1343_v43 = vld [vmem:[#allocation10 + $0x660] sm:$0xff] }
 0x383   : > { %1497 = vmatprep.subr.mxu1 %v1452_v46  ;;  %v1342_v46 = vld [vmem:[#allocation10 + $0x658] sm:$0xff] }
 0x384   : > { %1498 = vmatpush2.msra.mxu1 %v1451_v3  ;;  %v1341_v3 = vld [vmem:[#allocation10 + $0x650] sm:$0xff] }
 0x385   : > { %1499 = vmatprep.subr.mxu1 %v1450_v5  ;;  %v1340_v5 = vld [vmem:[#allocation10 + $0x648] sm:$0xff] }
 0x386   : > { %1500 = vmatpush2.msra.mxu1 %v1449_v40  ;;  %v1339_v40 = vld [vmem:[#allocation10 + $0x640] sm:$0xff] }
 0x387   : > { %1501 = vmatprep.subr.mxu1 %v1448_v42  ;;  %v1338_v42 = vld [vmem:[#allocation10 + $0x638] sm:$0xff] }
 0x388   : > { %1502 = vmatpush2.msra.mxu1 %v1447_v4  ;;  %v1337_v4 = vld [vmem:[#allocation10 + $0x630] sm:$0xff] }
 0x389   : > { %1503 = vmatprep.subr.mxu1 %v1446_v6  ;;  %v1336_v6 = vld [vmem:[#allocation10 + $0x628] sm:$0xff] }
 0x38a   : > { %1504 = vmatpush2.msra.mxu1 %v1445_v8  ;;  %v1335_v8 = vld [vmem:[#allocation10 + $0x620] sm:$0xff] }
 0x38b   : > { %1505 = vmatprep.subr.mxu1 %v1444_v10  ;;  %v1334_v10 = vld [vmem:[#allocation10 + $0x618] sm:$0xff] }
 0x38c   : > { %1506 = vmatpush2.msra.mxu1 %v1443_v48  ;;  %v1333_v48 = vld [vmem:[#allocation10 + $0x610] sm:$0xff] }
 0x38d   : > { %1507 = vmatprep.subr.mxu1 %v1442_v50  ;;  %v1332_v50 = vld [vmem:[#allocation10 + $0x608] sm:$0xff] }
 0x38e   : > { %1508 = vmatpush2.msra.mxu1 %v1441_v12  ;;  %v1331_v12 = vld [vmem:[#allocation10 + $0x600] sm:$0xff] }
 0x38f   : > { %1509 = vmatprep.subr.mxu1 %v1440_v14  ;;  %v1394_v14 = vld [vmem:[#allocation10 + $0x7f8] sm:$0xff] }
 0x390   : > { %1510 = vmatpush2.msra.mxu1 %v1439_v15  ;;  %v1393_v15 = vld [vmem:[#allocation10 + $0x7f0] sm:$0xff] }
 0x391   : > { %1511 = vmatprep.subr.mxu1 %v1438_v16  ;;  %v1392_v16 = vld [vmem:[#allocation10 + $0x7e8] sm:$0xff] }
 0x392   : > { %1512 = vmatpush2.msra.mxu1 %v1437_v17  ;;  %v1391_v17 = vld [vmem:[#allocation10 + $0x7e0] sm:$0xff] }
 0x393   : > { %1513 = vmatprep.subr.mxu1 %v1436_v57  ;;  %v1390_v57 = vld [vmem:[#allocation10 + $0x7d8] sm:$0xff] }
 0x394   : > { %1514 = vmatpush2.msra.mxu1 %v1435_v18  ;;  %v1389_v18 = vld [vmem:[#allocation10 + $0x7d0] sm:$0xff] }
 0x395   : > { %1515 = vmatprep.subr.mxu1 %v1434_v19  ;;  %v1388_v19 = vld [vmem:[#allocation10 + $0x7c8] sm:$0xff] }
 0x396   : > { %1516 = vmatpush2.msra.mxu1 %v1433_v21  ;;  %v1387_v21 = vld [vmem:[#allocation10 + $0x7c0] sm:$0xff] }
 0x397   : > { %1517 = vmatprep.subr.mxu1 %v1432_v41  ;;  %v1386_v41 = vld [vmem:[#allocation10 + $0x7b8] sm:$0xff] }
 0x398   : > { %1518 = vmatpush2.msra.mxu1 %v1431_v11  ;;  %v1385_v11 = vld [vmem:[#allocation10 + $0x7b0] sm:$0xff] }
 0x399   : > { %1519 = vmatprep.subr.mxu1 %v1430_v22  ;;  %v1384_v22 = vld [vmem:[#allocation10 + $0x7a8] sm:$0xff] }
 0x39a   : > { %1520 = vmatpush2.msra.mxu1 %v1429_v23  ;;  %v1383_v23 = vld [vmem:[#allocation10 + $0x7a0] sm:$0xff] }
 0x39b   : > { %1521 = vmatprep.subr.mxu1 %v1428_v24  ;;  %v1382_v24 = vld [vmem:[#allocation10 + $0x798] sm:$0xff] }
 0x39c   : > { %1522 = vmatpush2.msra.mxu1 %v1427_v25  ;;  %v1381_v25 = vld [vmem:[#allocation10 + $0x790] sm:$0xff] }
 0x39d   : > { %1524 = vmatmul.mubr.f32.vlgmr.msra.gmra.mxu1 %v2958_v38  ;;  %v1105_v38 = vsub.s32 2, %v2807_v52 }
 0x39f   : > { %v1106_v20 = vrot.slane %v2961_v2, %v1105_v38  ;;  %v1110_v53 = vrot.slane %v2963_v9, %v1105_v38  ;;  %v1355_v2 = vld [vmem:[#allocation10 + $0x6c0] sm:$0xff]  ;;  %v1354_v9 = vld [vmem:[#allocation10 + $0x6b8] sm:$0xff] }
 0x3a0   : > { %v1371_v38 = vld [vmem:[#allocation10 + $0x740] sm:$0xff] }
 0x41d   : > { %v1177_v36 = vpop.f32.mrf.mxu1 }
 0x41e   : > { %v1178_v28 = vadd.f32 %v1177_v36, %v1106_v20  ;;  %v1370_v20 = vld [vmem:[#allocation10 + $0x738] sm:$0xff]  ;;  %v1368_v36 = vld [vmem:[#allocation10 + $0x728] sm:$0xff] }
 0x41f   : > { %v1179_v37 = vpop.f32.mrf.mxu1 }
 0x420   : > { %v1180_v39 = vadd.f32 %v1179_v37, %v1110_v53  ;;  %v1182_v47 = vmax.f32 %v1178_v28, 0.0  ;;  %v1369_v53 = vld [vmem:[#allocation10 + $0x730] sm:$0xff]  ;;  %v1367_v28 = vld [vmem:[#allocation10 + $0x720] sm:$0xff]  ;;  %v1366_v37 = vld [vmem:[#allocation10 + $0x718] sm:$0xff] }
 0x422   : > { %v1183_v45 = vmax.f32 %v1180_v39, 0.0  ;;  %v1365_v39 = vld [vmem:[#allocation10 + $0x710] sm:$0xff] }
 0x424   : > { %1321 = vmatprep.mubr.f32.mxu0 %v1183_v45  ;;  %v1364_v45 = vld [vmem:[#allocation10 + $0x708] sm:$0xff] }
 0x425   : > { %1322 = vmatmul.mubr.f32.vlgmr.msra.gmra.mxu0 %v1182_v47  ;;  %v1363_v47 = vld [vmem:[#allocation10 + $0x700] sm:$0xff] }
 0x426   : > { %1531 = vmatpush1.msra.mxu0 %v1361_v49  ;;  %v1645_v49 = vld [vmem:[#allocation10 + $0x8f8] sm:$0xff] }
 0x427   : > { %1532 = vmatprep.subr.mxu0 %v1360_v44  ;;  %v1644_v44 = vld [vmem:[#allocation10 + $0x8f0] sm:$0xff]  ;;  %1686 = vmatprep.subr.mxu1 %v1645_v49 }
 0x428   : > { %1533 = vmatpush1.msra.mxu0 %v1359_v35  ;;  %v1643_v35 = vld [vmem:[#allocation10 + $0x8e8] sm:$0xff]  ;;  %1687 = vmatpush1.msra.mxu1 %v1644_v44 }
 0x429   : > { %1534 = vmatprep.subr.mxu0 %v1358_v51  ;;  %v1642_v51 = vld [vmem:[#allocation10 + $0x8e0] sm:$0xff]  ;;  %1688 = vmatprep.subr.mxu1 %v1643_v35  ;;  %v1655_v35 = vld [vmem:[#allocation10 + $0x948] sm:$0xff] }
 0x42a   : > { %1535 = vmatpush1.msra.mxu0 %v1357_v54  ;;  %v1641_v54 = vld [vmem:[#allocation10 + $0x8d8] sm:$0xff]  ;;  %1689 = vmatpush1.msra.mxu1 %v1642_v51  ;;  %v1654_v51 = vld [vmem:[#allocation10 + $0x940] sm:$0xff] }
 0x42b   : > { %1536 = vmatprep.subr.mxu0 %v1356_v55  ;;  %v1640_v55 = vld [vmem:[#allocation10 + $0x8d0] sm:$0xff]  ;;  %1690 = vmatprep.subr.mxu1 %v1641_v54  ;;  %v1653_v54 = vld [vmem:[#allocation10 + $0x938] sm:$0xff] }
 0x42c   : > { %1537 = vmatpush1.msra.mxu0 %v1355_v2  ;;  %v1639_v2 = vld [vmem:[#allocation10 + $0x8c8] sm:$0xff]  ;;  %1691 = vmatpush1.msra.mxu1 %v1640_v55  ;;  %v1652_v55 = vld [vmem:[#allocation10 + $0x930] sm:$0xff] }
 0x42d   : > { %1538 = vmatprep.subr.mxu0 %v1354_v9  ;;  %v1638_v9 = vld [vmem:[#allocation10 + $0x8c0] sm:$0xff]  ;;  %1692 = vmatprep.subr.mxu1 %v1639_v2  ;;  %v1651_v2 = vld [vmem:[#allocation10 + $0x928] sm:$0xff] }
 0x42e   : > { %1539 = vmatpush1.msra.mxu0 %v1353_v56  ;;  %v1637_v56 = vld [vmem:[#allocation10 + $0x8b8] sm:$0xff]  ;;  %1693 = vmatpush1.msra.mxu1 %v1638_v9  ;;  %v1650_v9 = vld [vmem:[#allocation10 + $0x920] sm:$0xff] }
 0x42f   : > { %1540 = vmatprep.subr.mxu0 %v1352_v58  ;;  %v1636_v58 = vld [vmem:[#allocation10 + $0x8b0] sm:$0xff]  ;;  %1694 = vmatprep.subr.mxu1 %v1637_v56  ;;  %v1649_v56 = vld [vmem:[#allocation10 + $0x918] sm:$0xff] }
 0x430   : > { %1541 = vmatpush1.msra.mxu0 %v1351_v59  ;;  %v1635_v59 = vld [vmem:[#allocation10 + $0x8a8] sm:$0xff]  ;;  %1695 = vmatpush1.msra.mxu1 %v1636_v58  ;;  %v1648_v58 = vld [vmem:[#allocation10 + $0x910] sm:$0xff] }
 0x431   : > { %1542 = vmatprep.subr.mxu0 %v1350_v60  ;;  %v1634_v60 = vld [vmem:[#allocation10 + $0x8a0] sm:$0xff]  ;;  %1696 = vmatprep.subr.mxu1 %v1635_v59  ;;  %v1647_v59 = vld [vmem:[#allocation10 + $0x908] sm:$0xff] }
 0x432   : > { %1543 = vmatpush1.msra.mxu0 %v1349_v62  ;;  %v1633_v62 = vld [vmem:[#allocation10 + $0x898] sm:$0xff]  ;;  %1697 = vmatpush1.msra.mxu1 %v1634_v60  ;;  %v1646_v60 = vld [vmem:[#allocation10 + $0x900] sm:$0xff] }
 0x433   : > { %1544 = vmatprep.subr.mxu0 %v1348_v63  ;;  %v1632_v63 = vld [vmem:[#allocation10 + $0x890] sm:$0xff]  ;;  %1698 = vmatprep.subr.mxu1 %v1633_v62  ;;  %v1791_v62 = vld [vmem:[#allocation10 + $0xaf8] sm:$0xff] }
 0x434   : > { %1545 = vmatpush1.msra.mxu0 %v1347_v0  ;;  %v1631_v0 = vld [vmem:[#allocation10 + $0x888] sm:$0xff]  ;;  %1699 = vmatpush1.msra.mxu1 %v1632_v63  ;;  %v1790_v63 = vld [vmem:[#allocation10 + $0xaf0] sm:$0xff] }
 0x435   : > { %1546 = vmatprep.subr.mxu0 %v1346_v1  ;;  %v1630_v1 = vld [vmem:[#allocation10 + $0x880] sm:$0xff]  ;;  %1700 = vmatprep.subr.mxu1 %v1631_v0  ;;  %v1789_v0 = vld [vmem:[#allocation10 + $0xae8] sm:$0xff] }
 0x436   : > { %1547 = vmatpush1.msra.mxu0 %v1345_v7  ;;  %v1629_v7 = vld [vmem:[#allocation10 + $0x878] sm:$0xff]  ;;  %1701 = vmatpush1.msra.mxu1 %v1630_v1  ;;  %v1788_v1 = vld [vmem:[#allocation10 + $0xae0] sm:$0xff] }
 0x437   : > { %1548 = vmatprep.subr.mxu0 %v1344_v13  ;;  %v1628_v13 = vld [vmem:[#allocation10 + $0x870] sm:$0xff]  ;;  %1702 = vmatprep.subr.mxu1 %v1629_v7  ;;  %v1787_v7 = vld [vmem:[#allocation10 + $0xad8] sm:$0xff] }
 0x438   : > { %1549 = vmatpush1.msra.mxu0 %v1343_v43  ;;  %v1627_v43 = vld [vmem:[#allocation10 + $0x868] sm:$0xff]  ;;  %1703 = vmatpush1.msra.mxu1 %v1628_v13  ;;  %v1786_v13 = vld [vmem:[#allocation10 + $0xad0] sm:$0xff] }
 0x439   : > { %1550 = vmatprep.subr.mxu0 %v1342_v46  ;;  %v1626_v46 = vld [vmem:[#allocation10 + $0x860] sm:$0xff]  ;;  %1704 = vmatprep.subr.mxu1 %v1627_v43  ;;  %v1785_v43 = vld [vmem:[#allocation10 + $0xac8] sm:$0xff] }
 0x43a   : > { %1551 = vmatpush1.msra.mxu0 %v1341_v3  ;;  %v1625_v3 = vld [vmem:[#allocation10 + $0x858] sm:$0xff]  ;;  %1705 = vmatpush1.msra.mxu1 %v1626_v46  ;;  %v1784_v46 = vld [vmem:[#allocation10 + $0xac0] sm:$0xff] }
 0x43b   : > { %1552 = vmatprep.subr.mxu0 %v1340_v5  ;;  %v1624_v5 = vld [vmem:[#allocation10 + $0x850] sm:$0xff]  ;;  %1706 = vmatprep.subr.mxu1 %v1625_v3  ;;  %v1783_v3 = vld [vmem:[#allocation10 + $0xab8] sm:$0xff] }
 0x43c   : > { %1553 = vmatpush1.msra.mxu0 %v1339_v40  ;;  %v1623_v40 = vld [vmem:[#allocation10 + $0x848] sm:$0xff]  ;;  %1707 = vmatpush1.msra.mxu1 %v1624_v5  ;;  %v1782_v5 = vld [vmem:[#allocation10 + $0xab0] sm:$0xff] }
 0x43d   : > { %1554 = vmatprep.subr.mxu0 %v1338_v42  ;;  %v1622_v42 = vld [vmem:[#allocation10 + $0x840] sm:$0xff]  ;;  %1708 = vmatprep.subr.mxu1 %v1623_v40  ;;  %v1781_v40 = vld [vmem:[#allocation10 + $0xaa8] sm:$0xff] }
 0x43e   : > { %1555 = vmatpush1.msra.mxu0 %v1337_v4  ;;  %v1621_v4 = vld [vmem:[#allocation10 + $0x838] sm:$0xff]  ;;  %1709 = vmatpush1.msra.mxu1 %v1622_v42  ;;  %v1780_v42 = vld [vmem:[#allocation10 + $0xaa0] sm:$0xff] }
 0x43f   : > { %1556 = vmatprep.subr.mxu0 %v1336_v6  ;;  %v1620_v6 = vld [vmem:[#allocation10 + $0x830] sm:$0xff]  ;;  %1710 = vmatprep.subr.mxu1 %v1621_v4  ;;  %v1779_v4 = vld [vmem:[#allocation10 + $0xa98] sm:$0xff] }
 0x440   : > { %1557 = vmatpush1.msra.mxu0 %v1335_v8  ;;  %v1619_v8 = vld [vmem:[#allocation10 + $0x828] sm:$0xff]  ;;  %1711 = vmatpush1.msra.mxu1 %v1620_v6  ;;  %v1778_v6 = vld [vmem:[#allocation10 + $0xa90] sm:$0xff] }
 0x441   : > { %1558 = vmatprep.subr.mxu0 %v1334_v10  ;;  %v1618_v10 = vld [vmem:[#allocation10 + $0x820] sm:$0xff]  ;;  %1712 = vmatprep.subr.mxu1 %v1619_v8  ;;  %v1777_v8 = vld [vmem:[#allocation10 + $0xa88] sm:$0xff] }
 0x442   : > { %1559 = vmatpush1.msra.mxu0 %v1333_v48  ;;  %v1617_v48 = vld [vmem:[#allocation10 + $0x818] sm:$0xff]  ;;  %1713 = vmatpush1.msra.mxu1 %v1618_v10  ;;  %v1776_v10 = vld [vmem:[#allocation10 + $0xa80] sm:$0xff] }
 0x443   : > { %1560 = vmatprep.subr.mxu0 %v1332_v50  ;;  %v1616_v50 = vld [vmem:[#allocation10 + $0x810] sm:$0xff]  ;;  %1714 = vmatprep.subr.mxu1 %v1617_v48  ;;  %v1775_v48 = vld [vmem:[#allocation10 + $0xa78] sm:$0xff] }
 0x444   : > { %1561 = vmatpush1.msra.mxu0 %v1331_v12  ;;  %v1615_v12 = vld [vmem:[#allocation10 + $0x808] sm:$0xff]  ;;  %1715 = vmatpush1.msra.mxu1 %v1616_v50  ;;  %v1774_v50 = vld [vmem:[#allocation10 + $0xa70] sm:$0xff] }
 0x445   : > { %1562 = vmatprep.subr.mxu0 %v1394_v14  ;;  %v1614_v14 = vld [vmem:[#allocation10 + $0x800] sm:$0xff]  ;;  %1716 = vmatprep.subr.mxu1 %v1615_v12  ;;  %v1773_v12 = vld [vmem:[#allocation10 + $0xa68] sm:$0xff] }
 0x446   : > { %1563 = vmatpush2.msra.mxu0 %v1393_v15  ;;  %v1677_v15 = vld [vmem:[#allocation10 + $0x9f8] sm:$0xff]  ;;  %1717 = vmatpush1.msra.mxu1 %v1614_v14  ;;  %v1772_v14 = vld [vmem:[#allocation10 + $0xa60] sm:$0xff] }
 0x447   : > { %1564 = vmatprep.subr.mxu0 %v1392_v16  ;;  %v1676_v16 = vld [vmem:[#allocation10 + $0x9f0] sm:$0xff]  ;;  %1718 = vmatprep.subr.mxu1 %v1677_v15  ;;  %v1771_v15 = vld [vmem:[#allocation10 + $0xa58] sm:$0xff] }
 0x448   : > { %1565 = vmatpush2.msra.mxu0 %v1391_v17  ;;  %v1675_v17 = vld [vmem:[#allocation10 + $0x9e8] sm:$0xff]  ;;  %1719 = vmatpush2.msra.mxu1 %v1676_v16  ;;  %v1770_v16 = vld [vmem:[#allocation10 + $0xa50] sm:$0xff] }
 0x449   : > { %1566 = vmatprep.subr.mxu0 %v1390_v57  ;;  %v1674_v57 = vld [vmem:[#allocation10 + $0x9e0] sm:$0xff]  ;;  %1720 = vmatprep.subr.mxu1 %v1675_v17  ;;  %v1769_v17 = vld [vmem:[#allocation10 + $0xa48] sm:$0xff] }
 0x44a   : > { %1567 = vmatpush2.msra.mxu0 %v1389_v18  ;;  %v1673_v18 = vld [vmem:[#allocation10 + $0x9d8] sm:$0xff]  ;;  %1721 = vmatpush2.msra.mxu1 %v1674_v57  ;;  %v1768_v57 = vld [vmem:[#allocation10 + $0xa40] sm:$0xff] }
 0x44b   : > { %1568 = vmatprep.subr.mxu0 %v1388_v19  ;;  %v1672_v19 = vld [vmem:[#allocation10 + $0x9d0] sm:$0xff]  ;;  %1722 = vmatprep.subr.mxu1 %v1673_v18  ;;  %v1767_v18 = vld [vmem:[#allocation10 + $0xa38] sm:$0xff] }
 0x44c   : > { %1569 = vmatpush2.msra.mxu0 %v1387_v21  ;;  %v1671_v21 = vld [vmem:[#allocation10 + $0x9c8] sm:$0xff]  ;;  %1723 = vmatpush2.msra.mxu1 %v1672_v19  ;;  %v1766_v19 = vld [vmem:[#allocation10 + $0xa30] sm:$0xff] }
 0x44d   : > { %1570 = vmatprep.subr.mxu0 %v1386_v41  ;;  %v1670_v41 = vld [vmem:[#allocation10 + $0x9c0] sm:$0xff]  ;;  %1724 = vmatprep.subr.mxu1 %v1671_v21  ;;  %v1765_v21 = vld [vmem:[#allocation10 + $0xa28] sm:$0xff] }
 0x44e   : > { %1571 = vmatpush2.msra.mxu0 %v1385_v11  ;;  %v1669_v11 = vld [vmem:[#allocation10 + $0x9b8] sm:$0xff]  ;;  %1725 = vmatpush2.msra.mxu1 %v1670_v41  ;;  %v1764_v41 = vld [vmem:[#allocation10 + $0xa20] sm:$0xff] }
 0x44f   : > { %1572 = vmatprep.subr.mxu0 %v1384_v22  ;;  %v1668_v22 = vld [vmem:[#allocation10 + $0x9b0] sm:$0xff]  ;;  %1726 = vmatprep.subr.mxu1 %v1669_v11  ;;  %v1763_v11 = vld [vmem:[#allocation10 + $0xa18] sm:$0xff] }
 0x450   : > { %1573 = vmatpush2.msra.mxu0 %v1383_v23  ;;  %v1667_v23 = vld [vmem:[#allocation10 + $0x9a8] sm:$0xff]  ;;  %1727 = vmatpush2.msra.mxu1 %v1668_v22  ;;  %v1762_v22 = vld [vmem:[#allocation10 + $0xa10] sm:$0xff] }
 0x451   : > { %1574 = vmatprep.subr.mxu0 %v1382_v24  ;;  %v1666_v24 = vld [vmem:[#allocation10 + $0x9a0] sm:$0xff]  ;;  %1728 = vmatprep.subr.mxu1 %v1667_v23  ;;  %v1761_v23 = vld [vmem:[#allocation10 + $0xa08] sm:$0xff] }
 0x452   : > { %1575 = vmatpush2.msra.mxu0 %v1381_v25  ;;  %v1665_v25 = vld [vmem:[#allocation10 + $0x998] sm:$0xff]  ;;  %1729 = vmatpush2.msra.mxu1 %v1666_v24  ;;  %v1760_v24 = vld [vmem:[#allocation10 + $0xa00] sm:$0xff] }
 0x453   : > { %1576 = vmatprep.subr.mxu0 %v1380_v26  ;;  %v1664_v26 = vld [vmem:[#allocation10 + $0x990] sm:$0xff]  ;;  %1730 = vmatprep.subr.mxu1 %v1665_v25  ;;  %v1823_v25 = vld [vmem:[#allocation10 + $0xbf8] sm:$0xff] }
 0x454   : > { %1577 = vmatpush2.msra.mxu0 %v1379_v27  ;;  %v1663_v27 = vld [vmem:[#allocation10 + $0x988] sm:$0xff]  ;;  %1731 = vmatpush2.msra.mxu1 %v1664_v26  ;;  %v1822_v26 = vld [vmem:[#allocation10 + $0xbf0] sm:$0xff] }
 0x455   : > { %1578 = vmatprep.subr.mxu0 %v1378_v61  ;;  %v1662_v61 = vld [vmem:[#allocation10 + $0x980] sm:$0xff]  ;;  %1732 = vmatprep.subr.mxu1 %v1663_v27  ;;  %v1821_v27 = vld [vmem:[#allocation10 + $0xbe8] sm:$0xff] }
 0x456   : > { %1579 = vmatpush2.msra.mxu0 %v1377_v29  ;;  %v1661_v29 = vld [vmem:[#allocation10 + $0x978] sm:$0xff]  ;;  %1733 = vmatpush2.msra.mxu1 %v1662_v61  ;;  %v1820_v61 = vld [vmem:[#allocation10 + $0xbe0] sm:$0xff] }
 0x457   : > { %1580 = vmatprep.subr.mxu0 %v1376_v31  ;;  %v1660_v31 = vld [vmem:[#allocation10 + $0x970] sm:$0xff]  ;;  %1734 = vmatprep.subr.mxu1 %v1661_v29  ;;  %v1819_v29 = vld [vmem:[#allocation10 + $0xbd8] sm:$0xff] }
 0x458   : > { %1581 = vmatpush2.msra.mxu0 %v1375_v32  ;;  %v1659_v32 = vld [vmem:[#allocation10 + $0x968] sm:$0xff]  ;;  %1735 = vmatpush2.msra.mxu1 %v1660_v31  ;;  %v1818_v31 = vld [vmem:[#allocation10 + $0xbd0] sm:$0xff] }
 0x459   : > { %1582 = vmatprep.subr.mxu0 %v1374_v33  ;;  %v1658_v33 = vld [vmem:[#allocation10 + $0x960] sm:$0xff]  ;;  %1736 = vmatprep.subr.mxu1 %v1659_v32  ;;  %v1817_v32 = vld [vmem:[#allocation10 + $0xbc8] sm:$0xff] }
 0x45a   : > { %1583 = vmatpush2.msra.mxu0 %v1373_v30  ;;  %v1657_v30 = vld [vmem:[#allocation10 + $0x958] sm:$0xff]  ;;  %1737 = vmatpush2.msra.mxu1 %v1658_v33  ;;  %v1816_v33 = vld [vmem:[#allocation10 + $0xbc0] sm:$0xff] }
 0x45b   : > { %1584 = vmatprep.subr.mxu0 %v1372_v34  ;;  %v1656_v34 = vld [vmem:[#allocation10 + $0x950] sm:$0xff]  ;;  %1738 = vmatprep.subr.mxu1 %v1657_v30  ;;  %v1815_v30 = vld [vmem:[#allocation10 + $0xbb8] sm:$0xff] }
 0x45c   : > { %1585 = vmatpush2.msra.mxu0 %v1371_v38  ;;  %1739 = vmatpush2.msra.mxu1 %v1656_v34  ;;  %v1251_v38 = vsub.s32 3, %v2807_v52  ;;  %v1814_v34 = vld [vmem:[#allocation10 + $0xbb0] sm:$0xff] }
 0x45d   : > { %1586 = vmatprep.subr.mxu0 %v1370_v20  ;;  %v2979_v20 = vld [vmem:[#allocation12] sm:$0xff]  ;;  %1740 = vmatprep.subr.mxu1 %v1655_v35 }
 0x45e   : > { %1587 = vmatpush2.msra.mxu0 %v1369_v53  ;;  %v1252_v53 = vrot.slane %v2979_v20, %v1251_v38  ;;  %1741 = vmatpush2.msra.mxu1 %v1654_v51  ;;  %v1804_v35 = vld [vmem:[#allocation10 + $0xb60] sm:$0xff]  ;;  %v1803_v51 = vld [vmem:[#allocation10 + $0xb58] sm:$0xff] }
 0x45f   : > { %1588 = vmatprep.subr.mxu0 %v1368_v36  ;;  %v2982_v36 = vld [vmem:[#allocation12 + $0x8] sm:$0xff]  ;;  %1742 = vmatprep.subr.mxu1 %v1653_v54  ;;  %v1802_v54 = vld [vmem:[#allocation10 + $0xb50] sm:$0xff] }
 0x460   : > { %1589 = vmatpush2.msra.mxu0 %v1367_v28  ;;  %v1256_v28 = vrot.slane %v2982_v36, %v1251_v38  ;;  %1743 = vmatpush2.msra.mxu1 %v1652_v55  ;;  %v1813_v38 = vld [vmem:[#allocation10 + $0xba8] sm:$0xff] }
 0x461   : > { %1590 = vmatprep.subr.mxu0 %v1366_v37  ;;  %1744 = vmatprep.subr.mxu1 %v1651_v2  ;;  %v1801_v55 = vld [vmem:[#allocation10 + $0xb48] sm:$0xff]  ;;  %v1800_v2 = vld [vmem:[#allocation10 + $0xb40] sm:$0xff] }
 0x462   : > { %1591 = vmatpush2.msra.mxu0 %v1365_v39  ;;  %1745 = vmatpush2.msra.mxu1 %v1650_v9  ;;  %v1603_v9 = vsub.s32 4, %v2807_v52 }
 0x463   : > { %1592 = vmatprep.subr.mxu0 %v1364_v45  ;;  %1746 = vmatprep.subr.mxu1 %v1649_v56  ;;  %v1525_v56 = vpop.f32.mrf.mxu1 }
 0x464   : > { %1593 = vmatpush2.msra.mxu0 %v1363_v47  ;;  %1747 = vmatpush2.msra.mxu1 %v1648_v58 }
 0x465   : > { %1748 = vmatprep.subr.mxu1 %v1647_v59  ;;  %1832 = vmatprep.subr.mxu0 %v1791_v62  ;;  %v1604_v59 = vrot.slane %v2979_v20, %v1603_v9  ;;  %v1608_v62 = vrot.slane %v2982_v36, %v1603_v9  ;;  %v1905_v9 = vld [vmem:[%s3115_s6] sm:$0xff] }
 0x466   : > { %1749 = vmatpush2.msra.mxu1 %v1646_v60 }
 0x4e5   : > { %v1323_v37 = vpop.f32.mrf.mxu0 }
 0x4e6   : > { %v1324_v39 = vadd.f32 %v1323_v37, %v1252_v53  ;;  %v1812_v53 = vld [vmem:[#allocation10 + $0xba0] sm:$0xff]  ;;  %v1810_v37 = vld [vmem:[#allocation10 + $0xb90] sm:$0xff] }
 0x4e7   : > { %v1325_v45 = vpop.f32.mrf.mxu0 }
 0x4e8   : > { %v1326_v47 = vadd.f32 %v1325_v45, %v1256_v28  ;;  %v1328_v44 = vmax.f32 %v1324_v39, 0.0  ;;  %v1811_v28 = vld [vmem:[#allocation10 + $0xb98] sm:$0xff]  ;;  %v1809_v39 = vld [vmem:[#allocation10 + $0xb88] sm:$0xff]  ;;  %v1808_v45 = vld [vmem:[#allocation10 + $0xb80] sm:$0xff] }
 0x4ea   : > { %v1329_v49 = vmax.f32 %v1326_v47, 0.0  ;;  %v1807_v47 = vld [vmem:[#allocation10 + $0xb78] sm:$0xff] }
 0x4ec   : > { %1594 = vmatprep.mubr.f32.mxu0 %v1329_v49  ;;  %v1806_v49 = vld [vmem:[#allocation10 + $0xb70] sm:$0xff] }
 0x4ed   : > { %1595 = vmatmul.mubr.f32.vlgmr.msra.gmra.mxu0 %v1328_v44  ;;  %v1805_v44 = vld [vmem:[#allocation10 + $0xb68] sm:$0xff] }
 0x4ee   : > { %1833 = vmatpush1.msra.mxu0 %v1790_v63  ;;  %v1527_v63 = vpop.f32.mrf.mxu1 }
 0x4ef   : > { %1834 = vmatprep.subr.mxu0 %v1789_v0 }
 0x4f0   : > { %1835 = vmatpush1.msra.mxu0 %v1788_v1 }
 0x4f1   : > { %1836 = vmatprep.subr.mxu0 %v1787_v7 }
 0x4f2   : > { %1837 = vmatpush1.msra.mxu0 %v1786_v13 }
 0x4f3   : > { %1838 = vmatprep.subr.mxu0 %v1785_v43 }
 0x4f4   : > { %1839 = vmatpush1.msra.mxu0 %v1784_v46 }
 0x4f5   : > { %1840 = vmatprep.subr.mxu0 %v1783_v3  ;;  %v1799_v3 = vld [vmem:[#allocation10 + $0xb38] sm:$0xff] }
 0x4f6   : > { %1841 = vmatpush1.msra.mxu0 %v1782_v5  ;;  %v1798_v5 = vld [vmem:[#allocation10 + $0xb30] sm:$0xff] }
 0x4f7   : > { %1842 = vmatprep.subr.mxu0 %v1781_v40  ;;  %v1797_v40 = vld [vmem:[#allocation10 + $0xb28] sm:$0xff] }
 0x4f8   : > { %1843 = vmatpush1.msra.mxu0 %v1780_v42  ;;  %v1796_v42 = vld [vmem:[#allocation10 + $0xb20] sm:$0xff] }
 0x4f9   : > { %1844 = vmatprep.subr.mxu0 %v1779_v4  ;;  %v1795_v4 = vld [vmem:[#allocation10 + $0xb18] sm:$0xff] }
 0x4fa   : > { %1845 = vmatpush1.msra.mxu0 %v1778_v6  ;;  %v1794_v6 = vld [vmem:[#allocation10 + $0xb10] sm:$0xff] }
 0x4fb   : > { %1846 = vmatprep.subr.mxu0 %v1777_v8  ;;  %v1793_v8 = vld [vmem:[#allocation10 + $0xb08] sm:$0xff] }
 0x4fc   : > { %1847 = vmatpush1.msra.mxu0 %v1776_v10  ;;  %v1792_v10 = vld [vmem:[#allocation10 + $0xb00] sm:$0xff] }
 0x4fd   : > { %1848 = vmatprep.subr.mxu0 %v1775_v48  ;;  %v1936_v48 = vld [vmem:[%s3115_s6 + $0xf8] sm:$0xff] }
 0x4fe   : > { %1849 = vmatpush1.msra.mxu0 %v1774_v50  ;;  %v1920_v50 = vld [vmem:[%s3115_s6 + $0x78] sm:$0xff]  ;;  %2166 = vmatprep.subr.mxu1 %v1936_v48 }
 0x4ff   : > { %1850 = vmatprep.subr.mxu0 %v1773_v12  ;;  %v1935_v12 = vld [vmem:[%s3115_s6 + $0xf0] sm:$0xff] }
 0x500   : > { %1851 = vmatpush1.msra.mxu0 %v1772_v14  ;;  %v1919_v14 = vld [vmem:[%s3115_s6 + $0x70] sm:$0xff] }
 0x501   : > { %1852 = vmatprep.subr.mxu0 %v1771_v15  ;;  %v1934_v15 = vld [vmem:[%s3115_s6 + $0xe8] sm:$0xff] }
 0x502   : > { %1853 = vmatpush1.msra.mxu0 %v1770_v16  ;;  %v1918_v16 = vld [vmem:[%s3115_s6 + $0x68] sm:$0xff] }
 0x503   : > { %1854 = vmatprep.subr.mxu0 %v1769_v17  ;;  %v1933_v17 = vld [vmem:[%s3115_s6 + $0xe0] sm:$0xff] }
 0x504   : > { %1855 = vmatpush1.msra.mxu0 %v1768_v57  ;;  %v1917_v57 = vld [vmem:[%s3115_s6 + $0x60] sm:$0xff] }
 0x505   : > { %1856 = vmatprep.subr.mxu0 %v1767_v18  ;;  %v1932_v18 = vld [vmem:[%s3115_s6 + $0xd8] sm:$0xff] }
 0x506   : > { %1857 = vmatpush1.msra.mxu0 %v1766_v19  ;;  %v1916_v19 = vld [vmem:[%s3115_s6 + $0x58] sm:$0xff] }
 0x507   : > { %1858 = vmatprep.subr.mxu0 %v1765_v21  ;;  %v1931_v21 = vld [vmem:[%s3115_s6 + $0xd0] sm:$0xff] }
 0x508   : > { %1859 = vmatpush1.msra.mxu0 %v1764_v41  ;;  %v1915_v41 = vld [vmem:[%s3115_s6 + $0x50] sm:$0xff] }
 0x509   : > { %1860 = vmatprep.subr.mxu0 %v1763_v11  ;;  %v1930_v11 = vld [vmem:[%s3115_s6 + $0xc8] sm:$0xff] }
 0x50a   : > { %1861 = vmatpush1.msra.mxu0 %v1762_v22  ;;  %v1914_v22 = vld [vmem:[%s3115_s6 + $0x48] sm:$0xff] }
 0x50b   : > { %1862 = vmatprep.subr.mxu0 %v1761_v23  ;;  %v1929_v23 = vld [vmem:[%s3115_s6 + $0xc0] sm:$0xff] }
 0x50c   : > { %1863 = vmatpush1.msra.mxu0 %v1760_v24  ;;  %v1913_v24 = vld [vmem:[%s3115_s6 + $0x40] sm:$0xff] }
 0x50d   : > { %1864 = vmatprep.subr.mxu0 %v1823_v25  ;;  %v1928_v25 = vld [vmem:[%s3115_s6 + $0xb8] sm:$0xff] }
 0x50e   : > { %1865 = vmatpush2.msra.mxu0 %v1822_v26  ;;  %v1912_v26 = vld [vmem:[%s3115_s6 + $0x38] sm:$0xff] }
 0x50f   : > { %1866 = vmatprep.subr.mxu0 %v1821_v27  ;;  %v1927_v27 = vld [vmem:[%s3115_s6 + $0xb0] sm:$0xff] }
 0x510   : > { %1867 = vmatpush2.msra.mxu0 %v1820_v61  ;;  %v1911_v61 = vld [vmem:[%s3115_s6 + $0x30] sm:$0xff] }
 0x511   : > { %1868 = vmatprep.subr.mxu0 %v1819_v29  ;;  %v1926_v29 = vld [vmem:[%s3115_s6 + $0xa8] sm:$0xff] }
 0x512   : > { %1869 = vmatpush2.msra.mxu0 %v1818_v31  ;;  %v1910_v31 = vld [vmem:[%s3115_s6 + $0x28] sm:$0xff] }
 0x513   : > { %1870 = vmatprep.subr.mxu0 %v1817_v32  ;;  %v1925_v32 = vld [vmem:[%s3115_s6 + $0xa0] sm:$0xff] }
 0x514   : > { %1871 = vmatpush2.msra.mxu0 %v1816_v33  ;;  %v1909_v33 = vld [vmem:[%s3115_s6 + $0x20] sm:$0xff] }
 0x515   : > { %1872 = vmatprep.subr.mxu0 %v1815_v30  ;;  %v1680_v30 = vsub.s32 5, %v2807_v52 }
 0x516   : > { %1873 = vmatpush2.msra.mxu0 %v1814_v34 }
 0x517   : > { %1874 = vmatprep.subr.mxu0 %v1813_v38  ;;  %v1681_v34 = vrot.slane %v2979_v20, %v1680_v30  ;;  %v1685_v38 = vrot.slane %v2982_v36, %v1680_v30 }
 0x518   : > { %1875 = vmatpush2.msra.mxu0 %v1812_v53 }
 0x519   : > { %1876 = vmatprep.subr.mxu0 %v1811_v28 }
 0x51a   : > { %1877 = vmatpush2.msra.mxu0 %v1810_v37 }
 0x51b   : > { %1878 = vmatprep.subr.mxu0 %v1809_v39 }
 0x51c   : > { %1879 = vmatpush2.msra.mxu0 %v1808_v45 }
 0x51d   : > { %1880 = vmatprep.subr.mxu0 %v1807_v47 }
 0x51e   : > { %1881 = vmatpush2.msra.mxu0 %v1806_v49  ;;  %v1924_v49 = vld [vmem:[%s3115_s6 + $0x98] sm:$0xff] }
 0x51f   : > { %1882 = vmatprep.subr.mxu0 %v1805_v44  ;;  %v1908_v44 = vld [vmem:[%s3115_s6 + $0x18] sm:$0xff] }
 0x520   : > { %1883 = vmatpush2.msra.mxu0 %v1804_v35  ;;  %v1923_v35 = vld [vmem:[%s3115_s6 + $0x90] sm:$0xff] }
 0x521   : > { %1884 = vmatprep.subr.mxu0 %v1803_v51  ;;  %v1907_v51 = vld [vmem:[%s3115_s6 + $0x10] sm:$0xff] }
 0x522   : > { %1885 = vmatpush2.msra.mxu0 %v1802_v54  ;;  %v1922_v54 = vld [vmem:[%s3115_s6 + $0x88] sm:$0xff] }
 0x523   : > { %1886 = vmatprep.subr.mxu0 %v1801_v55  ;;  %v1906_v55 = vld [vmem:[%s3115_s6 + $0x8] sm:$0xff] }
 0x524   : > { %1887 = vmatpush2.msra.mxu0 %v1800_v2  ;;  %v1921_v2 = vld [vmem:[%s3115_s6 + $0x80] sm:$0xff] }
 0x525   : > { %1888 = vmatprep.subr.mxu0 %v1799_v3 }
 0x526   : > { %1889 = vmatpush2.msra.mxu0 %v1798_v5 }
 0x527   : > { %1890 = vmatprep.subr.mxu0 %v1797_v40 }
 0x528   : > { %1891 = vmatpush2.msra.mxu0 %v1796_v42 }
 0x529   : > { %1892 = vmatprep.subr.mxu0 %v1795_v4 }
 0x52a   : > { %1893 = vmatpush2.msra.mxu0 %v1794_v6 }
 0x52b   : > { %1894 = vmatprep.subr.mxu0 %v1793_v8 }
 0x52c   : > { %1895 = vmatpush2.msra.mxu0 %v1792_v10 }
 0x5ad   : > { %v1596_v58 = vpop.f32.mrf.mxu0 }
 0x5ae   : > { %v1597_v60 = vadd.f32 %v1596_v58, %v1525_v56  ;;  %v1938_v56 = vrot.slane %v2979_v20, 7  ;;  %v1826_v58 = vsub.s32 6, %v2807_v52 }
 0x5af   : > { %v1598_v0 = vpop.f32.mrf.mxu0 }
 0x5b0   : > { %v1599_v1 = vadd.f32 %v1598_v0, %v1527_v63  ;;  %v1609_v7 = vadd.f32 %v1604_v59, %v1597_v60  ;;  %2209 = vpush %v1938_v56  ;;  %v1827_v59 = vrot.slane %v2979_v20, %v1826_v58  ;;  %v1831_v60 = vrot.slane %v2982_v36, %v1826_v58 }
 0x5b2   : > { %v1610_v13 = vadd.f32 %v1608_v62, %v1599_v1  ;;  %v1611_v46 = vmax.f32 %v1609_v7, 0.0 }
 0x5b4   : > { %v1612_v43 = vmax.f32 %v1610_v13, 0.0 }
 0x5b6   : > { %1750 = vmatprep.mubr.f32.mxu1 %v1612_v43 }
 0x5b7   : > { %1751 = vmatmul.mubr.f32.vlgmr.msra.gmra.mxu1 %v1611_v46 }
 0x5b8   : > { %2167 = vmatpush3.msra.mxu1 %v1920_v50 }
 0x5b9   : > { %2168 = vmatprep.subr.mxu1 %v1935_v12 }
 0x5ba   : > { %2169 = vmatpush3.msra.mxu1 %v1919_v14 }
 0x5bb   : > { %2170 = vmatprep.subr.mxu1 %v1934_v15 }
 0x5bc   : > { %2171 = vmatpush3.msra.mxu1 %v1918_v16 }
 0x5bd   : > { %2172 = vmatprep.subr.mxu1 %v1933_v17 }
 0x5be   : > { %2173 = vmatpush3.msra.mxu1 %v1917_v57 }
 0x5bf   : > { %2174 = vmatprep.subr.mxu1 %v1932_v18 }
 0x5c0   : > { %2175 = vmatpush3.msra.mxu1 %v1916_v19 }
 0x5c1   : > { %2176 = vmatprep.subr.mxu1 %v1931_v21 }
 0x5c2   : > { %2177 = vmatpush3.msra.mxu1 %v1915_v41 }
 0x5c3   : > { %2178 = vmatprep.subr.mxu1 %v1930_v11 }
 0x5c4   : > { %2179 = vmatpush3.msra.mxu1 %v1914_v22 }
 0x5c5   : > { %2180 = vmatprep.subr.mxu1 %v1929_v23 }
 0x5c6   : > { %2181 = vmatpush3.msra.mxu1 %v1913_v24 }
 0x5c7   : > { %2182 = vmatprep.subr.mxu1 %v1928_v25 }
 0x5c8   : > { %2183 = vmatpush3.msra.mxu1 %v1912_v26 }
 0x5c9   : > { %2184 = vmatprep.subr.mxu1 %v1927_v27 }
 0x5ca   : > { %2185 = vmatpush3.msra.mxu1 %v1911_v61 }
 0x5cb   : > { %2186 = vmatprep.subr.mxu1 %v1926_v29 }
 0x5cc   : > { %2187 = vmatpush3.msra.mxu1 %v1910_v31 }
 0x5cd   : > { %2188 = vmatprep.subr.mxu1 %v1925_v32 }
 0x5ce   : > { %2189 = vmatpush3.msra.mxu1 %v1909_v33 }
 0x5cf   : > { %2190 = vmatprep.subr.mxu1 %v1924_v49 }
 0x5d0   : > { %2191 = vmatpush3.msra.mxu1 %v1908_v44 }
 0x5d1   : > { %2192 = vmatprep.subr.mxu1 %v1923_v35 }
 0x5d2   : > { %2193 = vmatpush3.msra.mxu1 %v1907_v51 }
 0x5d3   : > { %2194 = vmatprep.subr.mxu1 %v1922_v54 }
 0x5d4   : > { %2195 = vmatpush3.msra.mxu1 %v1906_v55 }
 0x5d5   : > { %2196 = vmatprep.subr.mxu1 %v1921_v2 }
 0x5d6   : > { %2197 = vmatpush3.msra.mxu1 %v1905_v9 }
 0x5e1   : > { %s2210_s27 = spop %2209 }
 0x5e2   : > { %v1940_v3 = vstv %s2210_s27 }
 0x677   : > { %v1752_v53 = vpop.f32.mrf.mxu1 }
 0x678   : > { %v1753_v28 = vadd.f32 %v1752_v53, %v1681_v34 }
 0x679   : > { %v1754_v37 = vpop.f32.mrf.mxu1 }
 0x67a   : > { %v1755_v39 = vadd.f32 %v1754_v37, %v1685_v38  ;;  %v1757_v47 = vmax.f32 %v1753_v28, 0.0 }
 0x67c   : > { %v1758_v45 = vmax.f32 %v1755_v39, 0.0 }
 0x67e   : > { %1896 = vmatprep.mubr.f32.mxu0 %v1758_v45 }
 0x67f   : > { %1897 = vmatmul.mubr.f32.vlgmr.msra.gmra.mxu0 %v1757_v47 }
 0x73f   : > { %v1898_v62 = vpop.f32.mrf.mxu0 }
 0x740   : > { %v1899_v63 = vadd.f32 %v1898_v62, %v1827_v59 }
 0x741   : > { %v1900_v0 = vpop.f32.mrf.mxu0 }
 0x742   : > { %v1901_v1 = vadd.f32 %v1900_v0, %v1831_v60  ;;  %v1903_v13 = vmax.f32 %v1899_v63, 0.0 }
 0x744   : > { %v1904_v7 = vmax.f32 %v1901_v1, 0.0 }
 0x746   : > { %2006 = vmatprep.mubr.f32.mxu1 %v1904_v7 }
 0x747   : > { %2007 = vmatmul.mubr.f32.vlgmr.msra.gmra.mxu1 %v1903_v13 }
 0x807   : > { %v2198_v43 = vpop.f32.mrf.mxu1 }
 0x809   : > { %v2199_v46 = vpop.f32.mrf.mxu1 }
 0x80a   : > { %v2200_v52 = vadd.f32 %v2199_v46, %v2198_v43 }
 0x80c   : > { %v2009_v20 = vadd.f32 %v2200_v52, %v1940_v3 }
 0x80e   : > { %2013 = vst.msk [vmem:[%s403_s12] sm:$0xff] %vm2012_vm13, %v2009_v20 }
 0x80f PF: > { %p21_p8 = scmp.ge.s32.totalorder %s2738_s18, 4   ;;  %s3137_s27 = smov %s2553_s28 }
 0x810   : > { %s3138_s28 = smov %s2557_s29  ;;  %s3139_s29 = smov %s2750_s21 }
 0x811   : > { %s3140_s30 = smov %s2738_s18  ;;  %23 = sbr.rel (!%p21_p8) target bundleno = 6 (0x6), region = 122 }
 0x816   :  { %2033 = vsyncpa [#allocation3], 1 }
 0x817   :  { %2035 = vsyncpa [#allocation3 + $0x1], 1 }
 0x818   :  { %2036 = vsyncpa [#allocation5], 1 }
 0x819   :  { %2037 = vsyncpa [#allocation8], 1 }
 0x81a   :  { %2038 = vsyncpa [#allocation11], 1 }

</bundles_post_ra>
